<compile_context>
chip_gen: v5e
topology: v5e:2x2
jax: 0.10.0
libtpu: 0.0.40
codegen_flags: <defaults>
</compile_context>

<pallas_src>
import functools

import jax
import jax.numpy as jnp
from jax import lax
from jax.experimental import pallas as pl
from jax.experimental.pallas import tpu as pltpu


def _backbone_block_kernel(x_ref, w_ref, b_ref, o_ref, *, TN, P, K, F):
    # x_ref: (TN, P, K)  bf16 im2col patches (P = H*W, K = 9*C)
    # w_ref: (K, F)      bf16 conv weight, flattened (dy, dx, c) -> K
    # b_ref: (1, F)      f32 bias
    # o_ref: (TN, F)     f32 per-frame pooled features
    x = x_ref[...].reshape(TN * P, K)                    # merge frame+pixel dims
    acc = jnp.dot(x, w_ref[...],
                  preferred_element_type=jnp.float32)    # one MXU matmul, f32 acc
    acc = jnp.maximum(acc + b_ref[...], 0.0)             # bias + ReLU in f32
    acc = acc.reshape(TN, P, F)
    feat = jnp.sum(acc, axis=1) * jnp.float32(1.0 / P)   # global avg pool (XLU
    o_ref[...] = feat.astype(o_ref.dtype)                # reduce + const scale)


def _pick_frames_per_step(n_frames):
    # Largest TN in {8, 4, 2} that divides N while leaving >= 2 grid steps
    # (keeps both v7x TensorCores busy under dimension_semantics=("parallel",)).
    for tn in (8, 4, 2):
        if n_frames % tn == 0 and n_frames // tn >= 2:
            return tn
    return 1


def time_distributed_forward(x_bcthw, weight_hwio, bias_f):
    """x_bcthw: (B, C, T, H, W) f32; weight_hwio: (3,3,C,F); bias_f: (F,) -> (B, T, F) f32."""
    B, C, T, H, W = x_bcthw.shape
    F = weight_hwio.shape[-1]
    N = B * T
    P = H * W
    K = 9 * C

    # --- glue (pure JAX): permute + reshape + NCHW->NHWC + im2col -------------
    x = jnp.transpose(x_bcthw, (0, 2, 1, 3, 4)).reshape(N, C, H, W)   # (N,C,H,W)
    x = jnp.transpose(x, (0, 2, 3, 1))                                # (N,H,W,C)
    xp = jnp.pad(x, ((0, 0), (1, 1), (1, 1), (0, 0)))                 # zero pad
    # Tap order (dy, dx, c) matches the HWIO weight flattened to (9*C, F).
    taps = [xp[:, dy:dy + H, dx:dx + W, :]
            for dy in range(3) for dx in range(3)]
    patches = jnp.concatenate(taps, axis=-1).reshape(N, P, K)         # (N,P,K)

    patches_bf16 = patches.astype(jnp.bfloat16)
    w2d_bf16 = weight_hwio.reshape(K, F).astype(jnp.bfloat16)
    bias_2d = bias_f.reshape(1, F).astype(jnp.float32)

    TN = _pick_frames_per_step(N)
    kernel = functools.partial(_backbone_block_kernel, TN=TN, P=P, K=K, F=F)

    out = pl.pallas_call(
        kernel,
        out_shape=jax.ShapeDtypeStruct((N, F), jnp.float32),
        grid_spec=pltpu.PrefetchScalarGridSpec(
            num_scalar_prefetch=0,
            grid=(N // TN,),
            in_specs=[
                pl.BlockSpec((TN, P, K), lambda n: (n, 0, 0)),
                pl.BlockSpec((K, F), lambda n: (0, 0)),
                pl.BlockSpec((1, F), lambda n: (0, 0)),
            ],
            out_specs=pl.BlockSpec((TN, F), lambda n: (n, 0)),
        ),
        compiler_params=pltpu.CompilerParams(
            dimension_semantics=("parallel",)),
    )(patches_bf16, w2d_bf16, bias_2d)

    return out.reshape(B, T, F)


def _reference(x_bcthw, weight_hwio, bias_f):
    # Matches the kernel's numerics: inputs/weights rounded to bf16, f32 math.
    B, C, T, H, W = x_bcthw.shape
    F = weight_hwio.shape[-1]
    x = jnp.transpose(x_bcthw, (0, 2, 1, 3, 4)).reshape(B * T, C, H, W)
    x = jnp.transpose(x, (0, 2, 3, 1)).astype(jnp.bfloat16).astype(jnp.float32)
    w = weight_hwio.astype(jnp.bfloat16).astype(jnp.float32)
    y = lax.conv_general_dilated(
        x, w, window_strides=(1, 1), padding="SAME",
        dimension_numbers=("NHWC", "HWIO", "NHWC"),
        precision=lax.Precision.HIGHEST)
    y = jnp.maximum(y + bias_f, 0.0)
    y = jnp.mean(y, axis=(1, 2))
    return y.reshape(B, T, F)


if __name__ == "__main__":
    # TODO(synk): the original module wraps an arbitrary pretrained 2D backbone;
    # here it is a fixed synthetic Conv3x3 -> ReLU -> GlobalAvgPool backbone.
    B, C, T, H, W, F = 2, 4, 8, 16, 16, 32

    key = jax.random.PRNGKey(0)
    kx, kw, kb = jax.random.split(key, 3)
    x = jax.random.normal(kx, (B, C, T, H, W), dtype=jnp.float32)
    weight = jax.random.normal(kw, (3, 3, C, F), dtype=jnp.float32) * 0.1
    bias = jax.random.normal(kb, (F,), dtype=jnp.float32) * 0.1

    out = jax.block_until_ready(time_distributed_forward(x, weight, bias))
    ref = _reference(x, weight, bias)

    assert out.shape == (B, T, F)
    assert jnp.allclose(out, ref, atol=2e-4, rtol=2e-4), "mismatch vs reference"

    print("KERNEL_OK")
</pallas_src>

<mosaic_0001>
module attributes {stable_mosaic.version = 11 : i64} {
  func.func @_backbone_block_kernel(%arg0: i32, %arg1: memref<8x256x36xbf16, #tpu.memory_space<vmem>>, %arg2: memref<36x32xbf16, #tpu.memory_space<vmem>>, %arg3: memref<1x32xf32, #tpu.memory_space<vmem>>, %arg4: memref<8x32xf32, #tpu.memory_space<vmem>>) attributes {dimension_semantics = [#tpu.dimension_semantics<parallel>], iteration_bounds = array<i64: 2>, scalar_prefetch = 0 : i64, scratch_operands = 0 : i64, tpu.core_type = #tpu.core_type<tc>, window_params = [{transform_indices = @transform_0, window_bounds = array<i64: 8, 256, 36>}, {pipeline_mode = #tpu.pipeline_mode<synchronous>, transform_indices = @transform_1, window_bounds = array<i64: 36, 32>}, {pipeline_mode = #tpu.pipeline_mode<synchronous>, transform_indices = @transform_2, window_bounds = array<i64: 1, 32>}, {transform_indices = @transform_3, window_bounds = array<i64: 8, 32>}]} {
    %c0 = arith.constant 0 : index
    %c0_0 = arith.constant 0 : index
    %c0_1 = arith.constant 0 : index
    %0 = vector.load %arg1[%c0, %c0_0, %c0_1] : memref<8x256x36xbf16, #tpu.memory_space<vmem>>, vector<8x256x36xbf16>
    %1 = vector.shape_cast %0 : vector<8x256x36xbf16> to vector<2048x36xbf16>
    %c0_2 = arith.constant 0 : index
    %c0_3 = arith.constant 0 : index
    %2 = vector.load %arg2[%c0_2, %c0_3] : memref<36x32xbf16, #tpu.memory_space<vmem>>, vector<36x32xbf16>
    %cst = arith.constant dense<0.000000e+00> : vector<2048x32xf32>
    %3 = tpu.matmul %1, %2, %cst {dimension_numbers = #tpu.dot_dimension_numbers<[1], [0], [0], [1], [0, 0, 1, 1], [], []>} : vector<2048x36xbf16>, vector<36x32xbf16>, vector<2048x32xf32> -> vector<2048x32xf32>
    %c0_4 = arith.constant 0 : index
    %c0_5 = arith.constant 0 : index
    %4 = vector.load %arg3[%c0_4, %c0_5] : memref<1x32xf32, #tpu.memory_space<vmem>>, vector<1x32xf32>
    %5 = vector.broadcast %4 : vector<1x32xf32> to vector<2048x32xf32>
    %6 = arith.addf %3, %5 : vector<2048x32xf32>
    %cst_6 = arith.constant 0.000000e+00 : f32
    %7 = vector.broadcast %cst_6 : f32 to vector<2048x32xf32>
    %8 = arith.maximumf %6, %7 : vector<2048x32xf32>
    %9 = vector.shape_cast %8 : vector<2048x32xf32> to vector<8x256x32xf32>
    %cst_7 = arith.constant dense<0.000000e+00> : vector<8x32xf32>
    %10 = vector.multi_reduction <add>, %9, %cst_7 [1] : vector<8x256x32xf32> to vector<8x32xf32>
    %cst_8 = arith.constant 3.906250e-03 : f32
    %11 = vector.broadcast %cst_8 : f32 to vector<8x32xf32>
    %12 = arith.mulf %10, %11 : vector<8x32xf32>
    %c0_9 = arith.constant 0 : index
    %c0_10 = arith.constant 0 : index
    %13 = vector.load %arg4[%c0_9, %c0_10] : memref<8x32xf32, #tpu.memory_space<vmem>>, vector<8x32xf32>
    tpu.vector_store %arg4[%c0_9, %c0_10], %12 {strides = array<i32>} : memref<8x32xf32, #tpu.memory_space<vmem>>, vector<8x32xf32>,
    return
  }
  func.func @transform_0(%arg0: i32) -> (i32, i32, i32) {
    %c0_i32 = arith.constant 0 : i32
    %c0_i32_0 = arith.constant 0 : i32
    %c0_i32_1 = arith.constant 0 : i32
    return %arg0, %c0_i32, %c0_i32_0 : i32, i32, i32
  }
  func.func @transform_1(%arg0: i32) -> (i32, i32) {
    %c0_i32 = arith.constant 0 : i32
    %c0_i32_0 = arith.constant 0 : i32
    %c0_i32_1 = arith.constant 0 : i32
    return %c0_i32, %c0_i32_0 : i32, i32
  }
  func.func @transform_2(%arg0: i32) -> (i32, i32) {
    %c0_i32 = arith.constant 0 : i32
    %c0_i32_0 = arith.constant 0 : i32
    %c0_i32_1 = arith.constant 0 : i32
    return %c0_i32, %c0_i32_0 : i32, i32
  }
  func.func @transform_3(%arg0: i32) -> (i32, i32) {
    %c0_i32 = arith.constant 0 : i32
    %c0_i32_0 = arith.constant 0 : i32
    return %arg0, %c0_i32 : i32, i32
  }
}

</mosaic_0001>

<bundles_post_ra>
// kernel: tpu_custom_call.1
= control target key start
LH: loop header
LB: loop body
LE: loop exit
PB: predicated region body
PF: predicated region fallthrough
CT: control target
= control target key end

     0   :  { %8 = vsyncpa [#allocation3], 0  ;;  %s4951_s0 = inlined_call_operand.vmem [shape: bf16[16,256,36], index: 0, kind: input, shape index: {}]   ;;  %s4952_s1 = inlined_call_operand.vmem [shape: bf16[36,32], index: 1, kind: input, shape index: {}]   ;;  %s4953_s2 = inlined_call_operand.vmem [shape: f32[1,32], index: 2, kind: input, shape index: {}]   ;;  %s4954_s3 = inlined_call_operand.hbm [shape: f32[16,32], index: 3, kind: output, shape index: {}]  }
   0x1   :  { %10 = vsyncpa [#allocation3 + $0x1], 0  ;;  %s3975_s12 = smov 0   ;;  %s3977_s13 = smov 0  }
   0x2   :  { %s3979_s14 = smov 0   ;;  %s3981_s15 = smov 0  }
   0x3 LB: > { %s3048_s16 = sadd.s32 4294967295, %s3953_s15   ;;  %s3049_s17 = sadd.s32 4294967294, %s3953_s15   ;;  %s3953_s15 = sphi %s3981_s15, %s4960_s15   ;;  %s3949_s14 = sphi %s3979_s14, %s4959_s14   ;;  %s3945_s13 = sphi %s3977_s13, %s4958_s13   ;;  %s3941_s12 = sphi %s3975_s12, %s4957_s12  }
   0x4   : > { %s3998_s18 = sadd.s32 1, %s3953_s15   ;;  %s91_s19 = sadd.s32 1, %s3949_s14 }
   0x5   : > { %s88_s20 = ssub.s32 %s3953_s15, %s3998_s18  ;;  %p101_p0 = scmp.ne.s32.totalorder %s3949_s14, %s3945_s13 }
   0x6   : > { %p89_p1 = scmp.eq.s32.totalorder %s88_s20, 0  ;;  %p102_p2 = scmp.eq.s32.totalorder %s3048_s16, 1 }
   0x7   : > { %p107_p3 = scmp.ne.s32.totalorder %s3945_s13, %s3941_s12  ;;  %p108_p4 = scmp.eq.s32.totalorder %s3049_s17, 1 }
   0x8   : > { %s4008_s21 = scalar_select %p89_p1, %s3949_s14, %s91_s19  }
   0x9   : > { %p4010_p5 = por %p102_p2, %p101_p0  ;;  %p4014_p6 = por %p108_p4, %p107_p3 }
   0xa   : > { %p3052_p7 = scmp.ge.s32.totalorder %s3953_s15, 1  ;;  %p142_p8 = scmp.lt.s32.totalorder %s3953_s15, 3 }
   0xc   : > { %p143_p9 = pnand %p3052_p7, %p142_p8 }
   0xd   : > { %s4023_s26 = sshll.u32 (!%p143_p9), %s3048_s16, 3  ;;  %s164_s20 = sand.u32 (!%p143_p9), 1, %s3945_s13  }
   0xe   : > { %146 = sbr.rel (%p143_p9) target bundleno = 700 (0x2bc), region = 32  ;;  %p168_p10 = scmp.lt.s32.totalorder (!%p143_p9), %s4023_s26, 15 }
   0xf   : > { %s4914_s24 = sshll.u32 (!%p143_p9), %s164_s20, 3  ;;  %s2985_s28 = scalar_lea.hbm (!%p143_p9), %s4954_s3, %s4023_s26 }
  0x10   : > { %s166_s29 = scalar_lea.vmem (!%p143_p9), [#allocation2], %s4914_s24  ;;  %s2989_s4 = sshll.u32 (!%p143_p9), %s2985_s28, 4  ;;  %s2990_s4 = int_to_ptr.hbm [resolvable:$true] %s2989_s4 }
  0x11   : > { %s3905_s5 = sshra.s32 (!%p143_p9), %s2990_s4, 4  ;;  %s3911_s9 = scalar_lea.hbm (!%p143_p9), %s4954_s3, 16  ;;  %s3906_s5 = int_to_ptr.hbm [resolvable:$true] %s3905_s5 }
  0x12   : > { %s3907_s6 = scalar_lea.hbm (!%p143_p9), %s3906_s5, 8  ;;  %p3912_p0 = scmp.lt.s32.totalorder (!%p143_p9), %s3906_s5, %s4954_s3 }
  0x13   : > { %v435_v0 = vld [vmem:[%s4952_s1 + $0x10] sm:$0x3]  ;;  %vm1480_vm0 = vcmask 1041408   ;;  %s169_s27 = scalar_select %p168_p10, %s4023_s26, 15  ;;  %v3839_v4 = vld [vmem:[%s4952_s1 + $0x8] sm:$0xff]  ;;  %v3838_v5 = vld [vmem:[%s4952_s1] sm:$0xff] }
  0x14   : > { %v1089_v1 = vunpack.c.l.b16 %v435_v0  ;;  %vm1095_vm1 = vcmask 293888   ;;  %v4109_v44 = vld [vmem:[%s4953_s2] ss:$0 sm:$0xff]  ;;  %vm2389_vm2 = vcmask 261120   ;;  %vm2958_vm3 = vcmask 1041409   ;;  %s2975_s26 = scalar_lea.sflag [#allocation3], %s164_s20  ;;  %p3908_p11 = scmp.ne.s32.totalorder %s3906_s5, %s3907_s6 }
  0x15   : > { %s3709_s30 = sshll.u32 %s169_s27, 7  ;;  %vm2960_vm4 = vcmask 1042434   ;;  %vm2962_vm5 = vcmask 1043459   ;;  %vm2964_vm6 = vcmask 1044484   ;;  %vm2966_vm7 = vcmask 1045509   ;;  %p3913_p1 = scmp.lt.s32.totalorder %s3911_s9, %s3907_s6 }
  0x16   : > { %v1092_v2 = vpack.c.b16 %v1089_v1, %v1089_v1  ;;  %s4036_s8 = scalar_lea.vmem %s4951_s0, %s3709_s30  ;;  %vm2968_vm8 = vcmask 1046534   ;;  %s2987_s30 = sshll.u32 %s166_s29, 4  ;;  %vm2970_vm9 = vcmask 1047559   ;;  %s2988_s30 = int_to_ptr.vmem [resolvable:$true] %s2987_s30 }
  0x17   : > { %v3710_v6 = vld [vmem:[%s4036_s8] sm:$0xff]  ;;  %v3711_v10 = vld [vmem:[%s4036_s8 + $0x8] sm:$0xff]  ;;  %v3712_v14 = vld [vmem:[%s4036_s8 + $0x10] sm:$0xff]  ;;  %p3909_p12 = pnand %p3908_p11, %p4010_p5  ;;  %p3914_p2 = por %p3913_p1, %p3912_p0 }
  0x18   : > { %v1482_v3 = vsel %vm1480_vm0, %v1092_v2, 0  ;;  %v3742_v7 = vld [vmem:[%s4036_s8 + $0x100] sm:$0xff]  ;;  %v3743_v11 = vld [vmem:[%s4036_s8 + $0x108] sm:$0xff]  ;;  %v3744_v15 = vld [vmem:[%s4036_s8 + $0x110] sm:$0xff] }
  0x19   : > { %1489 = vmatpush.bf16.msra.mxu0 %v1482_v3  ;;  %3840 = vmatpush.bf16.msra.mxu1 %v1482_v3  ;;  %v3774_v8 = vld [vmem:[%s4036_s8 + $0x200] sm:$0xff]  ;;  %v3775_v12 = vld [vmem:[%s4036_s8 + $0x208] sm:$0xff]  ;;  %v3776_v16 = vld [vmem:[%s4036_s8 + $0x210] sm:$0xff]  ;;  %p3910_p13 = pneg %p3909_p12 }
  0x1a   : > { %3841 = vmatpush.bf16.msra.mxu2 %v1482_v3  ;;  %3842 = vmatpush.bf16.msra.mxu3 %v1482_v3  ;;  %v3806_v9 = vld [vmem:[%s4036_s8 + $0x300] sm:$0xff]  ;;  %v3807_v13 = vld [vmem:[%s4036_s8 + $0x308] sm:$0xff]  ;;  %v3808_v17 = vld [vmem:[%s4036_s8 + $0x310] sm:$0xff] }
  0x1b   : > { %v3713_v18 = vld [vmem:[%s4036_s8 + $0x18] sm:$0xff]  ;;  %v3714_v22 = vld [vmem:[%s4036_s8 + $0x20] sm:$0xff]  ;;  %v3715_v26 = vld [vmem:[%s4036_s8 + $0x28] sm:$0xff]  ;;  %p3915_p3 = pnand %p3914_p2, %p3910_p13 }
  0x1c   : > { %v3745_v19 = vld [vmem:[%s4036_s8 + $0x118] sm:$0xff]  ;;  %v3746_v23 = vld [vmem:[%s4036_s8 + $0x120] sm:$0xff]  ;;  %v3747_v27 = vld [vmem:[%s4036_s8 + $0x128] sm:$0xff] }
  0x1d   : > { %1490 = vmatpush.bf16.msra.mxu0 %v3839_v4  ;;  %3843 = vmatpush.bf16.msra.mxu1 %v3839_v4  ;;  %v3777_v20 = vld [vmem:[%s4036_s8 + $0x218] sm:$0xff]  ;;  %v3778_v24 = vld [vmem:[%s4036_s8 + $0x220] sm:$0xff]  ;;  %v3779_v28 = vld [vmem:[%s4036_s8 + $0x228] sm:$0xff] }
  0x1e   : > { %3844 = vmatpush.bf16.msra.mxu2 %v3839_v4  ;;  %3845 = vmatpush.bf16.msra.mxu3 %v3839_v4  ;;  %v3809_v21 = vld [vmem:[%s4036_s8 + $0x318] sm:$0xff]  ;;  %v3810_v25 = vld [vmem:[%s4036_s8 + $0x320] sm:$0xff]  ;;  %v3811_v29 = vld [vmem:[%s4036_s8 + $0x328] sm:$0xff] }
  0x1f   : > { %v3716_v30 = vld [vmem:[%s4036_s8 + $0x30] sm:$0xff]  ;;  %v3717_v34 = vld [vmem:[%s4036_s8 + $0x38] sm:$0xff]  ;;  %v3718_v38 = vld [vmem:[%s4036_s8 + $0x40] sm:$0xff] }
  0x20   : > { %v3748_v31 = vld [vmem:[%s4036_s8 + $0x130] sm:$0xff]  ;;  %v3749_v35 = vld [vmem:[%s4036_s8 + $0x138] sm:$0xff]  ;;  %v3750_v39 = vld [vmem:[%s4036_s8 + $0x140] sm:$0xff] }
  0x21   : > { %1491 = vmatpush.bf16.msra.mxu0 %v3838_v5  ;;  %3846 = vmatpush.bf16.msra.mxu1 %v3838_v5  ;;  %v3780_v32 = vld [vmem:[%s4036_s8 + $0x230] sm:$0xff]  ;;  %v3781_v36 = vld [vmem:[%s4036_s8 + $0x238] sm:$0xff]  ;;  %v3782_v42 = vld [vmem:[%s4036_s8 + $0x240] sm:$0xff] }
  0x22   : > { %3847 = vmatpush.bf16.msra.mxu2 %v3838_v5  ;;  %3848 = vmatpush.bf16.msra.mxu3 %v3838_v5  ;;  %v3812_v33 = vld [vmem:[%s4036_s8 + $0x330] sm:$0xff]  ;;  %v3813_v37 = vld [vmem:[%s4036_s8 + $0x338] sm:$0xff]  ;;  %v3814_v43 = vld [vmem:[%s4036_s8 + $0x340] sm:$0xff] }
  0x23   : > { %v3719_v3 = vld [vmem:[%s4036_s8 + $0x48] sm:$0xff] }
  0x24   : > { %3577 = vmatmul.msk.bf16.vlgmr.msra.gmra.mxu0 %vm1095_vm1, %v3710_v6  ;;  %3609 = vmatmul.msk.bf16.vlgmr.msra.gmra.mxu1 %vm1095_vm1, %v3742_v7  ;;  %v3751_v4 = vld [vmem:[%s4036_s8 + $0x148] sm:$0xff] }
  0x25   : > { %3641 = vmatmul.msk.bf16.vlgmr.msra.gmra.mxu2 %vm1095_vm1, %v3774_v8  ;;  %3673 = vmatmul.msk.bf16.vlgmr.msra.gmra.mxu3 %vm1095_vm1, %v3806_v9 }
  0x34   : > { %3578 = vmatmul.msk.bf16.gmra.mxu0 %vm1095_vm1, %v3711_v10  ;;  %3610 = vmatmul.msk.bf16.gmra.mxu1 %vm1095_vm1, %v3743_v11  ;;  %v3783_v11 = vld [vmem:[%s4036_s8 + $0x248] sm:$0xff] }
  0x35   : > { %3642 = vmatmul.msk.bf16.gmra.mxu2 %vm1095_vm1, %v3775_v12  ;;  %3674 = vmatmul.msk.bf16.gmra.mxu3 %vm1095_vm1, %v3807_v13  ;;  %v3815_v12 = vld [vmem:[%s4036_s8 + $0x348] sm:$0xff] }
  0x44   : > { %3579 = vmatmul.msk.bf16.gmra.mxu0 %vm1095_vm1, %v3712_v14  ;;  %3611 = vmatmul.msk.bf16.gmra.mxu1 %vm1095_vm1, %v3744_v15 }
  0x45   : > { %3643 = vmatmul.msk.bf16.gmra.mxu2 %vm1095_vm1, %v3776_v16  ;;  %3675 = vmatmul.msk.bf16.gmra.mxu3 %vm1095_vm1, %v3808_v17 }
  0x54   : > { %3580 = vmatmul.msk.bf16.gmra.mxu0 %vm1095_vm1, %v3713_v18  ;;  %3612 = vmatmul.msk.bf16.gmra.mxu1 %vm1095_vm1, %v3745_v19 }
  0x55   : > { %3644 = vmatmul.msk.bf16.gmra.mxu2 %vm1095_vm1, %v3777_v20  ;;  %3676 = vmatmul.msk.bf16.gmra.mxu3 %vm1095_vm1, %v3809_v21 }
  0x64   : > { %3581 = vmatmul.msk.bf16.gmra.mxu0 %vm1095_vm1, %v3714_v22  ;;  %3613 = vmatmul.msk.bf16.gmra.mxu1 %vm1095_vm1, %v3746_v23 }
  0x65   : > { %3645 = vmatmul.msk.bf16.gmra.mxu2 %vm1095_vm1, %v3778_v24  ;;  %3677 = vmatmul.msk.bf16.gmra.mxu3 %vm1095_vm1, %v3810_v25 }
  0x74   : > { %3582 = vmatmul.msk.bf16.gmra.mxu0 %vm1095_vm1, %v3715_v26  ;;  %3614 = vmatmul.msk.bf16.gmra.mxu1 %vm1095_vm1, %v3747_v27 }
  0x75   : > { %3646 = vmatmul.msk.bf16.gmra.mxu2 %vm1095_vm1, %v3779_v28  ;;  %3678 = vmatmul.msk.bf16.gmra.mxu3 %vm1095_vm1, %v3811_v29 }
  0x84   : > { %3583 = vmatmul.msk.bf16.gmra.mxu0 %vm1095_vm1, %v3716_v30  ;;  %3615 = vmatmul.msk.bf16.gmra.mxu1 %vm1095_vm1, %v3748_v31 }
  0x85   : > { %3647 = vmatmul.msk.bf16.gmra.mxu2 %vm1095_vm1, %v3780_v32  ;;  %3679 = vmatmul.msk.bf16.gmra.mxu3 %vm1095_vm1, %v3812_v33 }
  0x94   : > { %3584 = vmatmul.msk.bf16.gmra.mxu0 %vm1095_vm1, %v3717_v34  ;;  %3616 = vmatmul.msk.bf16.gmra.mxu1 %vm1095_vm1, %v3749_v35 }
  0x95   : > { %3648 = vmatmul.msk.bf16.gmra.mxu2 %vm1095_vm1, %v3781_v36  ;;  %3680 = vmatmul.msk.bf16.gmra.mxu3 %vm1095_vm1, %v3813_v37 }
  0xa1   : > { %v1493_v40 = vpop.f32.mrf.mxu0  ;;  %v1653_v41 = vpop.f32.mrf.mxu1 }
  0xa2   : > { %v1494_v45 = vadd.f32 %v4109_v44, %v1493_v40  ;;  %v1654_v46 = vadd.f32 %v4109_v44, %v1653_v41 }
  0xa4   : > { %3585 = vmatmul.msk.bf16.gmra.mxu0 %vm1095_vm1, %v3718_v38  ;;  %3617 = vmatmul.msk.bf16.gmra.mxu1 %vm1095_vm1, %v3750_v39  ;;  %v2133_v51 = vmax.f32 %v1494_v45, 0.0  ;;  %v2197_v52 = vmax.f32 %v1654_v46, 0.0 }
  0xa5   : > { %3649 = vmatmul.msk.bf16.gmra.mxu2 %vm1095_vm1, %v3782_v42  ;;  %3681 = vmatmul.msk.bf16.gmra.mxu3 %vm1095_vm1, %v3814_v43 }
  0xa6   : > { %v2390_v59 = vsel %vm2389_vm2, %v2133_v51, 0.0  ;;  %v2528_v60 = vsel %vm2389_vm2, %v2197_v52, 0.0  ;;  %v3720_v52 = vld [vmem:[%s4036_s8 + $0x50] sm:$0xff] }
  0xa8   : > { %v1813_v47 = vpop.f32.mrf.mxu2  ;;  %v1973_v48 = vpop.f32.mrf.mxu3 }
  0xa9   : > { %v1495_v49 = vpop.f32.mrf.mxu0  ;;  %v1655_v50 = vpop.f32.mrf.mxu1  ;;  %v1814_v57 = vadd.f32 %v4109_v44, %v1813_v47  ;;  %v1974_v58 = vadd.f32 %v4109_v44, %v1973_v48 }
  0xaa   : > { %v1496_v53 = vadd.f32 %v4109_v44, %v1495_v49  ;;  %v1656_v54 = vadd.f32 %v4109_v44, %v1655_v50 }
  0xab   : > { %v2261_v5 = vmax.f32 %v1814_v57, 0.0  ;;  %v2325_v6 = vmax.f32 %v1974_v58, 0.0  ;;  %v3784_v58 = vld [vmem:[%s4036_s8 + $0x250] sm:$0xff] }
  0xac   : > { %v2134_v55 = vmax.f32 %v1496_v53, 0.0  ;;  %v2198_v56 = vmax.f32 %v1656_v54, 0.0  ;;  %v3752_v53 = vld [vmem:[%s4036_s8 + $0x150] sm:$0xff] }
  0xad   : > { %v2666_v19 = vsel %vm2389_vm2, %v2261_v5, 0.0  ;;  %v2804_v20 = vsel %vm2389_vm2, %v2325_v6, 0.0 }
  0xae   : > { %v2391_v61 = vsel %vm2389_vm2, %v2134_v55, 0.0  ;;  %v2529_v62 = vsel %vm2389_vm2, %v2198_v56, 0.0 }
  0xaf   : > { %v2392_v63 = vadd.f32 %v2391_v61, %v2390_v59  ;;  %v2530_v0 = vadd.f32 %v2529_v62, %v2528_v60  ;;  %v3816_v59 = vld [vmem:[%s4036_s8 + $0x350] sm:$0xff] }
  0xb0   : > { %v1815_v1 = vpop.f32.mrf.mxu2  ;;  %v1975_v2 = vpop.f32.mrf.mxu3 }
  0xb1   : > { %v1816_v7 = vadd.f32 %v4109_v44, %v1815_v1  ;;  %v1976_v8 = vadd.f32 %v4109_v44, %v1975_v2  ;;  %v1498_v9 = vpop.f32.mrf.mxu0  ;;  %v1658_v10 = vpop.f32.mrf.mxu1 }
  0xb2   : > { %v1499_v13 = vadd.f32 %v4109_v44, %v1498_v9  ;;  %v1659_v14 = vadd.f32 %v4109_v44, %v1658_v10 }
  0xb3   : > { %v2262_v15 = vmax.f32 %v1816_v7, 0.0  ;;  %v2326_v16 = vmax.f32 %v1976_v8, 0.0 }
  0xb4   : > { %v2135_v17 = vmax.f32 %v1499_v13, 0.0  ;;  %v2199_v18 = vmax.f32 %v1659_v14, 0.0  ;;  %3586 = vmatmul.msk.bf16.gmra.mxu0 %vm1095_vm1, %v3719_v3  ;;  %3618 = vmatmul.msk.bf16.gmra.mxu1 %vm1095_vm1, %v3751_v4 }
  0xb5   : > { %v2667_v21 = vsel %vm2389_vm2, %v2262_v15, 0.0  ;;  %v2805_v22 = vsel %vm2389_vm2, %v2326_v16, 0.0  ;;  %3650 = vmatmul.msk.bf16.gmra.mxu2 %vm1095_vm1, %v3783_v11  ;;  %3682 = vmatmul.msk.bf16.gmra.mxu3 %vm1095_vm1, %v3815_v12 }
  0xb6   : > { %v2668_v23 = vadd.f32 %v2667_v21, %v2666_v19  ;;  %v2806_v24 = vadd.f32 %v2805_v22, %v2804_v20  ;;  %v2393_v25 = vsel %vm2389_vm2, %v2135_v17, 0.0  ;;  %v2531_v26 = vsel %vm2389_vm2, %v2199_v18, 0.0 }
  0xb7   : > { %v2394_v27 = vadd.f32 %v2393_v25, %v2392_v63  ;;  %v2532_v28 = vadd.f32 %v2531_v26, %v2530_v0 }
  0xb8   : > { %v1818_v29 = vpop.f32.mrf.mxu2  ;;  %v1978_v30 = vpop.f32.mrf.mxu3 }
  0xb9   : > { %v1819_v31 = vadd.f32 %v4109_v44, %v1818_v29  ;;  %v1979_v32 = vadd.f32 %v4109_v44, %v1978_v30  ;;  %v1500_v33 = vpop.f32.mrf.mxu0  ;;  %v1660_v34 = vpop.f32.mrf.mxu1 }
  0xba   : > { %v1501_v35 = vadd.f32 %v4109_v44, %v1500_v33  ;;  %v1661_v36 = vadd.f32 %v4109_v44, %v1660_v34  ;;  %v3753_v33 = vld [vmem:[%s4036_s8 + $0x158] sm:$0xff] }
  0xbb   : > { %v2263_v37 = vmax.f32 %v1819_v31, 0.0  ;;  %v2327_v38 = vmax.f32 %v1979_v32, 0.0  ;;  %v3721_v32 = vld [vmem:[%s4036_s8 + $0x58] sm:$0xff] }
  0xbc   : > { %v2136_v39 = vmax.f32 %v1501_v35, 0.0  ;;  %v2200_v40 = vmax.f32 %v1661_v36, 0.0 }
  0xbd   : > { %v2669_v41 = vsel %vm2389_vm2, %v2263_v37, 0.0  ;;  %v2807_v42 = vsel %vm2389_vm2, %v2327_v38, 0.0  ;;  %v3785_v38 = vld [vmem:[%s4036_s8 + $0x258] sm:$0xff] }
  0xbe   : > { %v2670_v43 = vadd.f32 %v2669_v41, %v2668_v23  ;;  %v2808_v45 = vadd.f32 %v2807_v42, %v2806_v24  ;;  %v2395_v46 = vsel %vm2389_vm2, %v2136_v39, 0.0  ;;  %v2533_v47 = vsel %vm2389_vm2, %v2200_v40, 0.0  ;;  %v3817_v39 = vld [vmem:[%s4036_s8 + $0x358] sm:$0xff] }
  0xbf   : > { %v2396_v48 = vadd.f32 %v2395_v46, %v2394_v27  ;;  %v2534_v49 = vadd.f32 %v2533_v47, %v2532_v28 }
  0xc0   : > { %v1820_v50 = vpop.f32.mrf.mxu2  ;;  %v1980_v51 = vpop.f32.mrf.mxu3 }
  0xc1   : > { %v1821_v54 = vadd.f32 %v4109_v44, %v1820_v50  ;;  %v1981_v55 = vadd.f32 %v4109_v44, %v1980_v51  ;;  %v1503_v56 = vpop.f32.mrf.mxu0  ;;  %v1663_v57 = vpop.f32.mrf.mxu1 }
  0xc2   : > { %v1504_v60 = vadd.f32 %v4109_v44, %v1503_v56  ;;  %v1664_v61 = vadd.f32 %v4109_v44, %v1663_v57 }
  0xc3   : > { %v2264_v62 = vmax.f32 %v1821_v54, 0.0  ;;  %v2328_v63 = vmax.f32 %v1981_v55, 0.0 }
  0xc4   : > { %v2137_v0 = vmax.f32 %v1504_v60, 0.0  ;;  %v2201_v1 = vmax.f32 %v1664_v61, 0.0  ;;  %3587 = vmatmul.msk.bf16.gmra.mxu0 %vm1095_vm1, %v3720_v52  ;;  %3619 = vmatmul.msk.bf16.gmra.mxu1 %vm1095_vm1, %v3752_v53 }
  0xc5   : > { %v2671_v2 = vsel %vm2389_vm2, %v2264_v62, 0.0  ;;  %v2809_v3 = vsel %vm2389_vm2, %v2328_v63, 0.0  ;;  %3651 = vmatmul.msk.bf16.gmra.mxu2 %vm1095_vm1, %v3784_v58  ;;  %3683 = vmatmul.msk.bf16.gmra.mxu3 %vm1095_vm1, %v3816_v59 }
  0xc6   : > { %v2672_v4 = vadd.f32 %v2671_v2, %v2670_v43  ;;  %v2810_v5 = vadd.f32 %v2809_v3, %v2808_v45  ;;  %v2397_v6 = vsel %vm2389_vm2, %v2137_v0, 0.0  ;;  %v2535_v7 = vsel %vm2389_vm2, %v2201_v1, 0.0 }
  0xc7   : > { %v2398_v8 = vadd.f32 %v2397_v6, %v2396_v48  ;;  %v2536_v9 = vadd.f32 %v2535_v7, %v2534_v49 }
  0xc8   : > { %v1823_v10 = vpop.f32.mrf.mxu2  ;;  %v1983_v11 = vpop.f32.mrf.mxu3 }
  0xc9   : > { %v1824_v12 = vadd.f32 %v4109_v44, %v1823_v10  ;;  %v1984_v13 = vadd.f32 %v4109_v44, %v1983_v11  ;;  %v1505_v14 = vpop.f32.mrf.mxu0  ;;  %v1665_v15 = vpop.f32.mrf.mxu1 }
  0xca   : > { %v1506_v16 = vadd.f32 %v4109_v44, %v1505_v14  ;;  %v1666_v17 = vadd.f32 %v4109_v44, %v1665_v15  ;;  %v3754_v14 = vld [vmem:[%s4036_s8 + $0x160] sm:$0xff] }
  0xcb   : > { %v2265_v18 = vmax.f32 %v1824_v12, 0.0  ;;  %v2329_v19 = vmax.f32 %v1984_v13, 0.0  ;;  %v3722_v13 = vld [vmem:[%s4036_s8 + $0x60] sm:$0xff] }
  0xcc   : > { %v2138_v20 = vmax.f32 %v1506_v16, 0.0  ;;  %v2202_v21 = vmax.f32 %v1666_v17, 0.0 }
  0xcd   : > { %v2673_v22 = vsel %vm2389_vm2, %v2265_v18, 0.0  ;;  %v2811_v23 = vsel %vm2389_vm2, %v2329_v19, 0.0  ;;  %v3786_v19 = vld [vmem:[%s4036_s8 + $0x260] sm:$0xff] }
  0xce   : > { %v2674_v24 = vadd.f32 %v2673_v22, %v2672_v4  ;;  %v2812_v25 = vadd.f32 %v2811_v23, %v2810_v5  ;;  %v2399_v26 = vsel %vm2389_vm2, %v2138_v20, 0.0  ;;  %v2537_v27 = vsel %vm2389_vm2, %v2202_v21, 0.0  ;;  %v3818_v20 = vld [vmem:[%s4036_s8 + $0x360] sm:$0xff] }
  0xcf   : > { %v2400_v28 = vadd.f32 %v2399_v26, %v2398_v8  ;;  %v2538_v29 = vadd.f32 %v2537_v27, %v2536_v9 }
  0xd0   : > { %v1825_v30 = vpop.f32.mrf.mxu2  ;;  %v1985_v31 = vpop.f32.mrf.mxu3 }
  0xd1   : > { %v1826_v34 = vadd.f32 %v4109_v44, %v1825_v30  ;;  %v1986_v35 = vadd.f32 %v4109_v44, %v1985_v31  ;;  %v1508_v36 = vpop.f32.mrf.mxu0  ;;  %v1668_v37 = vpop.f32.mrf.mxu1 }
  0xd2   : > { %v1509_v40 = vadd.f32 %v4109_v44, %v1508_v36  ;;  %v1669_v41 = vadd.f32 %v4109_v44, %v1668_v37 }
  0xd3   : > { %v2266_v42 = vmax.f32 %v1826_v34, 0.0  ;;  %v2330_v43 = vmax.f32 %v1986_v35, 0.0 }
  0xd4   : > { %v2139_v45 = vmax.f32 %v1509_v40, 0.0  ;;  %v2203_v46 = vmax.f32 %v1669_v41, 0.0  ;;  %3588 = vmatmul.msk.bf16.gmra.mxu0 %vm1095_vm1, %v3721_v32  ;;  %3620 = vmatmul.msk.bf16.gmra.mxu1 %vm1095_vm1, %v3753_v33 }
  0xd5   : > { %v2675_v47 = vsel %vm2389_vm2, %v2266_v42, 0.0  ;;  %v2813_v48 = vsel %vm2389_vm2, %v2330_v43, 0.0  ;;  %3652 = vmatmul.msk.bf16.gmra.mxu2 %vm1095_vm1, %v3785_v38  ;;  %3684 = vmatmul.msk.bf16.gmra.mxu3 %vm1095_vm1, %v3817_v39 }
  0xd6   : > { %v2676_v49 = vadd.f32 %v2675_v47, %v2674_v24  ;;  %v2814_v50 = vadd.f32 %v2813_v48, %v2812_v25  ;;  %v2401_v51 = vsel %vm2389_vm2, %v2139_v45, 0.0  ;;  %v2539_v52 = vsel %vm2389_vm2, %v2203_v46, 0.0 }
  0xd7   : > { %v2402_v53 = vadd.f32 %v2401_v51, %v2400_v28  ;;  %v2540_v54 = vadd.f32 %v2539_v52, %v2538_v29 }
  0xd8   : > { %v1828_v55 = vpop.f32.mrf.mxu2  ;;  %v1988_v56 = vpop.f32.mrf.mxu3 }
  0xd9   : > { %v1829_v57 = vadd.f32 %v4109_v44, %v1828_v55  ;;  %v1989_v58 = vadd.f32 %v4109_v44, %v1988_v56  ;;  %v1510_v59 = vpop.f32.mrf.mxu0  ;;  %v1670_v60 = vpop.f32.mrf.mxu1 }
  0xda   : > { %v1511_v61 = vadd.f32 %v4109_v44, %v1510_v59  ;;  %v1671_v62 = vadd.f32 %v4109_v44, %v1670_v60  ;;  %v3755_v59 = vld [vmem:[%s4036_s8 + $0x168] sm:$0xff] }
  0xdb   : > { %v2267_v63 = vmax.f32 %v1829_v57, 0.0  ;;  %v2331_v0 = vmax.f32 %v1989_v58, 0.0  ;;  %v3723_v58 = vld [vmem:[%s4036_s8 + $0x68] sm:$0xff] }
  0xdc   : > { %v2140_v1 = vmax.f32 %v1511_v61, 0.0  ;;  %v2204_v2 = vmax.f32 %v1671_v62, 0.0 }
  0xdd   : > { %v2677_v3 = vsel %vm2389_vm2, %v2267_v63, 0.0  ;;  %v2815_v4 = vsel %vm2389_vm2, %v2331_v0, 0.0  ;;  %v3787_v0 = vld [vmem:[%s4036_s8 + $0x268] sm:$0xff] }
  0xde   : > { %v2678_v5 = vadd.f32 %v2677_v3, %v2676_v49  ;;  %v2816_v6 = vadd.f32 %v2815_v4, %v2814_v50  ;;  %v2403_v7 = vsel %vm2389_vm2, %v2140_v1, 0.0  ;;  %v2541_v8 = vsel %vm2389_vm2, %v2204_v2, 0.0  ;;  %v3819_v1 = vld [vmem:[%s4036_s8 + $0x368] sm:$0xff] }
  0xdf   : > { %v2404_v9 = vadd.f32 %v2403_v7, %v2402_v53  ;;  %v2542_v10 = vadd.f32 %v2541_v8, %v2540_v54 }
  0xe0   : > { %v1830_v11 = vpop.f32.mrf.mxu2  ;;  %v1990_v12 = vpop.f32.mrf.mxu3 }
  0xe1   : > { %v1831_v15 = vadd.f32 %v4109_v44, %v1830_v11  ;;  %v1991_v16 = vadd.f32 %v4109_v44, %v1990_v12  ;;  %v1513_v17 = vpop.f32.mrf.mxu0  ;;  %v1673_v18 = vpop.f32.mrf.mxu1 }
  0xe2   : > { %v1514_v21 = vadd.f32 %v4109_v44, %v1513_v17  ;;  %v1674_v22 = vadd.f32 %v4109_v44, %v1673_v18 }
  0xe3   : > { %v2268_v23 = vmax.f32 %v1831_v15, 0.0  ;;  %v2332_v24 = vmax.f32 %v1991_v16, 0.0 }
  0xe4   : > { %v2141_v25 = vmax.f32 %v1514_v21, 0.0  ;;  %v2205_v26 = vmax.f32 %v1674_v22, 0.0  ;;  %3589 = vmatmul.msk.bf16.gmra.mxu0 %vm1095_vm1, %v3722_v13  ;;  %3621 = vmatmul.msk.bf16.gmra.mxu1 %vm1095_vm1, %v3754_v14 }
  0xe5   : > { %v2679_v27 = vsel %vm2389_vm2, %v2268_v23, 0.0  ;;  %v2817_v28 = vsel %vm2389_vm2, %v2332_v24, 0.0  ;;  %3653 = vmatmul.msk.bf16.gmra.mxu2 %vm1095_vm1, %v3786_v19  ;;  %3685 = vmatmul.msk.bf16.gmra.mxu3 %vm1095_vm1, %v3818_v20 }
  0xe6   : > { %v2680_v29 = vadd.f32 %v2679_v27, %v2678_v5  ;;  %v2818_v30 = vadd.f32 %v2817_v28, %v2816_v6  ;;  %v2405_v31 = vsel %vm2389_vm2, %v2141_v25, 0.0  ;;  %v2543_v32 = vsel %vm2389_vm2, %v2205_v26, 0.0 }
  0xe7   : > { %v2406_v33 = vadd.f32 %v2405_v31, %v2404_v9  ;;  %v2544_v34 = vadd.f32 %v2543_v32, %v2542_v10 }
  0xe8   : > { %v1833_v35 = vpop.f32.mrf.mxu2  ;;  %v1993_v36 = vpop.f32.mrf.mxu3 }
  0xe9   : > { %v1834_v37 = vadd.f32 %v4109_v44, %v1833_v35  ;;  %v1994_v38 = vadd.f32 %v4109_v44, %v1993_v36  ;;  %v1515_v39 = vpop.f32.mrf.mxu0  ;;  %v1675_v40 = vpop.f32.mrf.mxu1 }
  0xea   : > { %v1516_v41 = vadd.f32 %v4109_v44, %v1515_v39  ;;  %v1676_v42 = vadd.f32 %v4109_v44, %v1675_v40  ;;  %v3756_v39 = vld [vmem:[%s4036_s8 + $0x170] sm:$0xff] }
  0xeb   : > { %v2269_v43 = vmax.f32 %v1834_v37, 0.0  ;;  %v2333_v45 = vmax.f32 %v1994_v38, 0.0  ;;  %v3724_v38 = vld [vmem:[%s4036_s8 + $0x70] sm:$0xff] }
  0xec   : > { %v2142_v46 = vmax.f32 %v1516_v41, 0.0  ;;  %v2206_v47 = vmax.f32 %v1676_v42, 0.0 }
  0xed   : > { %v2681_v48 = vsel %vm2389_vm2, %v2269_v43, 0.0  ;;  %v2819_v49 = vsel %vm2389_vm2, %v2333_v45, 0.0  ;;  %v3788_v45 = vld [vmem:[%s4036_s8 + $0x270] sm:$0xff] }
  0xee   : > { %v2682_v50 = vadd.f32 %v2681_v48, %v2680_v29  ;;  %v2820_v51 = vadd.f32 %v2819_v49, %v2818_v30  ;;  %v2407_v52 = vsel %vm2389_vm2, %v2142_v46, 0.0  ;;  %v2545_v53 = vsel %vm2389_vm2, %v2206_v47, 0.0  ;;  %v3820_v46 = vld [vmem:[%s4036_s8 + $0x370] sm:$0xff] }
  0xef   : > { %v2408_v54 = vadd.f32 %v2407_v52, %v2406_v33  ;;  %v2546_v55 = vadd.f32 %v2545_v53, %v2544_v34 }
  0xf0   : > { %v1835_v56 = vpop.f32.mrf.mxu2  ;;  %v1995_v57 = vpop.f32.mrf.mxu3 }
  0xf1   : > { %v1836_v60 = vadd.f32 %v4109_v44, %v1835_v56  ;;  %v1996_v61 = vadd.f32 %v4109_v44, %v1995_v57  ;;  %v1518_v62 = vpop.f32.mrf.mxu0  ;;  %v1678_v63 = vpop.f32.mrf.mxu1 }
  0xf2   : > { %v1519_v2 = vadd.f32 %v4109_v44, %v1518_v62  ;;  %v1679_v3 = vadd.f32 %v4109_v44, %v1678_v63 }
  0xf3   : > { %v2270_v4 = vmax.f32 %v1836_v60, 0.0  ;;  %v2334_v5 = vmax.f32 %v1996_v61, 0.0 }
  0xf4   : > { %v2143_v6 = vmax.f32 %v1519_v2, 0.0  ;;  %v2207_v7 = vmax.f32 %v1679_v3, 0.0  ;;  %3590 = vmatmul.msk.bf16.gmra.mxu0 %vm1095_vm1, %v3723_v58  ;;  %3622 = vmatmul.msk.bf16.gmra.mxu1 %vm1095_vm1, %v3755_v59 }
  0xf5   : > { %v2683_v8 = vsel %vm2389_vm2, %v2270_v4, 0.0  ;;  %v2821_v9 = vsel %vm2389_vm2, %v2334_v5, 0.0  ;;  %3654 = vmatmul.msk.bf16.gmra.mxu2 %vm1095_vm1, %v3787_v0  ;;  %3686 = vmatmul.msk.bf16.gmra.mxu3 %vm1095_vm1, %v3819_v1 }
  0xf6   : > { %v2684_v10 = vadd.f32 %v2683_v8, %v2682_v50  ;;  %v2822_v11 = vadd.f32 %v2821_v9, %v2820_v51  ;;  %v2409_v12 = vsel %vm2389_vm2, %v2143_v6, 0.0  ;;  %v2547_v13 = vsel %vm2389_vm2, %v2207_v7, 0.0 }
  0xf7   : > { %v2410_v14 = vadd.f32 %v2409_v12, %v2408_v54  ;;  %v2548_v15 = vadd.f32 %v2547_v13, %v2546_v55 }
  0xf8   : > { %v1838_v16 = vpop.f32.mrf.mxu2  ;;  %v1998_v17 = vpop.f32.mrf.mxu3 }
  0xf9   : > { %v1839_v18 = vadd.f32 %v4109_v44, %v1838_v16  ;;  %v1999_v19 = vadd.f32 %v4109_v44, %v1998_v17  ;;  %v1520_v20 = vpop.f32.mrf.mxu0  ;;  %v1680_v21 = vpop.f32.mrf.mxu1 }
  0xfa   : > { %v1521_v22 = vadd.f32 %v4109_v44, %v1520_v20  ;;  %v1681_v23 = vadd.f32 %v4109_v44, %v1680_v21  ;;  %v3757_v20 = vld [vmem:[%s4036_s8 + $0x178] sm:$0xff] }
  0xfb   : > { %v2271_v24 = vmax.f32 %v1839_v18, 0.0  ;;  %v2335_v25 = vmax.f32 %v1999_v19, 0.0  ;;  %v3725_v19 = vld [vmem:[%s4036_s8 + $0x78] sm:$0xff] }
  0xfc   : > { %v2144_v26 = vmax.f32 %v1521_v22, 0.0  ;;  %v2208_v27 = vmax.f32 %v1681_v23, 0.0 }
  0xfd   : > { %v2685_v28 = vsel %vm2389_vm2, %v2271_v24, 0.0  ;;  %v2823_v29 = vsel %vm2389_vm2, %v2335_v25, 0.0  ;;  %v3789_v25 = vld [vmem:[%s4036_s8 + $0x278] sm:$0xff] }
  0xfe   : > { %v2686_v30 = vadd.f32 %v2685_v28, %v2684_v10  ;;  %v2824_v31 = vadd.f32 %v2823_v29, %v2822_v11  ;;  %v2411_v32 = vsel %vm2389_vm2, %v2144_v26, 0.0  ;;  %v2549_v33 = vsel %vm2389_vm2, %v2208_v27, 0.0  ;;  %v3821_v26 = vld [vmem:[%s4036_s8 + $0x378] sm:$0xff] }
  0xff   : > { %v2412_v34 = vadd.f32 %v2411_v32, %v2410_v14  ;;  %v2550_v35 = vadd.f32 %v2549_v33, %v2548_v15 }
 0x100   : > { %v1840_v36 = vpop.f32.mrf.mxu2  ;;  %v2000_v37 = vpop.f32.mrf.mxu3 }
 0x101   : > { %v1841_v40 = vadd.f32 %v4109_v44, %v1840_v36  ;;  %v2001_v41 = vadd.f32 %v4109_v44, %v2000_v37  ;;  %v1523_v42 = vpop.f32.mrf.mxu0  ;;  %v1683_v43 = vpop.f32.mrf.mxu1 }
 0x102   : > { %v1524_v47 = vadd.f32 %v4109_v44, %v1523_v42  ;;  %v1684_v48 = vadd.f32 %v4109_v44, %v1683_v43 }
 0x103   : > { %v2272_v49 = vmax.f32 %v1841_v40, 0.0  ;;  %v2336_v50 = vmax.f32 %v2001_v41, 0.0 }
 0x104   : > { %v2145_v51 = vmax.f32 %v1524_v47, 0.0  ;;  %v2209_v52 = vmax.f32 %v1684_v48, 0.0  ;;  %3591 = vmatmul.msk.bf16.gmra.mxu0 %vm1095_vm1, %v3724_v38  ;;  %3623 = vmatmul.msk.bf16.gmra.mxu1 %vm1095_vm1, %v3756_v39 }
 0x105   : > { %v2687_v53 = vsel %vm2389_vm2, %v2272_v49, 0.0  ;;  %v2825_v54 = vsel %vm2389_vm2, %v2336_v50, 0.0  ;;  %3655 = vmatmul.msk.bf16.gmra.mxu2 %vm1095_vm1, %v3788_v45  ;;  %3687 = vmatmul.msk.bf16.gmra.mxu3 %vm1095_vm1, %v3820_v46 }
 0x106   : > { %v2688_v55 = vadd.f32 %v2687_v53, %v2686_v30  ;;  %v2826_v56 = vadd.f32 %v2825_v54, %v2824_v31  ;;  %v2413_v57 = vsel %vm2389_vm2, %v2145_v51, 0.0  ;;  %v2551_v58 = vsel %vm2389_vm2, %v2209_v52, 0.0 }
 0x107   : > { %v2414_v59 = vadd.f32 %v2413_v57, %v2412_v34  ;;  %v2552_v60 = vadd.f32 %v2551_v58, %v2550_v35 }
 0x108   : > { %v1843_v61 = vpop.f32.mrf.mxu2  ;;  %v2003_v62 = vpop.f32.mrf.mxu3 }
 0x109   : > { %v1844_v63 = vadd.f32 %v4109_v44, %v1843_v61  ;;  %v2004_v0 = vadd.f32 %v4109_v44, %v2003_v62  ;;  %v1525_v1 = vpop.f32.mrf.mxu0  ;;  %v1685_v2 = vpop.f32.mrf.mxu1 }
 0x10a   : > { %v1526_v3 = vadd.f32 %v4109_v44, %v1525_v1  ;;  %v1686_v4 = vadd.f32 %v4109_v44, %v1685_v2  ;;  %v3758_v1 = vld [vmem:[%s4036_s8 + $0x180] sm:$0xff] }
 0x10b   : > { %v2273_v5 = vmax.f32 %v1844_v63, 0.0  ;;  %v2337_v6 = vmax.f32 %v2004_v0, 0.0  ;;  %v3726_v0 = vld [vmem:[%s4036_s8 + $0x80] sm:$0xff] }
 0x10c   : > { %v2146_v7 = vmax.f32 %v1526_v3, 0.0  ;;  %v2210_v8 = vmax.f32 %v1686_v4, 0.0 }
 0x10d   : > { %v2689_v9 = vsel %vm2389_vm2, %v2273_v5, 0.0  ;;  %v2827_v10 = vsel %vm2389_vm2, %v2337_v6, 0.0  ;;  %v3790_v6 = vld [vmem:[%s4036_s8 + $0x280] sm:$0xff] }
 0x10e   : > { %v2690_v11 = vadd.f32 %v2689_v9, %v2688_v55  ;;  %v2828_v12 = vadd.f32 %v2827_v10, %v2826_v56  ;;  %v2415_v13 = vsel %vm2389_vm2, %v2146_v7, 0.0  ;;  %v2553_v14 = vsel %vm2389_vm2, %v2210_v8, 0.0  ;;  %v3822_v7 = vld [vmem:[%s4036_s8 + $0x380] sm:$0xff] }
 0x10f   : > { %v2416_v15 = vadd.f32 %v2415_v13, %v2414_v59  ;;  %v2554_v16 = vadd.f32 %v2553_v14, %v2552_v60 }
 0x110   : > { %v1845_v17 = vpop.f32.mrf.mxu2  ;;  %v2005_v18 = vpop.f32.mrf.mxu3 }
 0x111   : > { %v1846_v21 = vadd.f32 %v4109_v44, %v1845_v17  ;;  %v2006_v22 = vadd.f32 %v4109_v44, %v2005_v18  ;;  %v1528_v23 = vpop.f32.mrf.mxu0  ;;  %v1688_v24 = vpop.f32.mrf.mxu1 }
 0x112   : > { %v1529_v27 = vadd.f32 %v4109_v44, %v1528_v23  ;;  %v1689_v28 = vadd.f32 %v4109_v44, %v1688_v24 }
 0x113   : > { %v2274_v29 = vmax.f32 %v1846_v21, 0.0  ;;  %v2338_v30 = vmax.f32 %v2006_v22, 0.0 }
 0x114   : > { %v2147_v31 = vmax.f32 %v1529_v27, 0.0  ;;  %v2211_v32 = vmax.f32 %v1689_v28, 0.0  ;;  %3592 = vmatmul.msk.bf16.gmra.mxu0 %vm1095_vm1, %v3725_v19  ;;  %3624 = vmatmul.msk.bf16.gmra.mxu1 %vm1095_vm1, %v3757_v20 }
 0x115   : > { %v2691_v33 = vsel %vm2389_vm2, %v2274_v29, 0.0  ;;  %v2829_v34 = vsel %vm2389_vm2, %v2338_v30, 0.0  ;;  %3656 = vmatmul.msk.bf16.gmra.mxu2 %vm1095_vm1, %v3789_v25  ;;  %3688 = vmatmul.msk.bf16.gmra.mxu3 %vm1095_vm1, %v3821_v26 }
 0x116   : > { %v2692_v35 = vadd.f32 %v2691_v33, %v2690_v11  ;;  %v2830_v36 = vadd.f32 %v2829_v34, %v2828_v12  ;;  %v2417_v37 = vsel %vm2389_vm2, %v2147_v31, 0.0  ;;  %v2555_v38 = vsel %vm2389_vm2, %v2211_v32, 0.0 }
 0x117   : > { %v2418_v39 = vadd.f32 %v2417_v37, %v2416_v15  ;;  %v2556_v40 = vadd.f32 %v2555_v38, %v2554_v16 }
 0x118   : > { %v1848_v41 = vpop.f32.mrf.mxu2  ;;  %v2008_v42 = vpop.f32.mrf.mxu3 }
 0x119   : > { %v1849_v43 = vadd.f32 %v4109_v44, %v1848_v41  ;;  %v2009_v45 = vadd.f32 %v4109_v44, %v2008_v42  ;;  %v1530_v46 = vpop.f32.mrf.mxu0  ;;  %v1690_v47 = vpop.f32.mrf.mxu1 }
 0x11a   : > { %v1531_v48 = vadd.f32 %v4109_v44, %v1530_v46  ;;  %v1691_v49 = vadd.f32 %v4109_v44, %v1690_v47  ;;  %v3759_v46 = vld [vmem:[%s4036_s8 + $0x188] sm:$0xff] }
 0x11b   : > { %v2275_v50 = vmax.f32 %v1849_v43, 0.0  ;;  %v2339_v51 = vmax.f32 %v2009_v45, 0.0  ;;  %v3727_v45 = vld [vmem:[%s4036_s8 + $0x88] sm:$0xff] }
 0x11c   : > { %v2148_v52 = vmax.f32 %v1531_v48, 0.0  ;;  %v2212_v53 = vmax.f32 %v1691_v49, 0.0 }
 0x11d   : > { %v2693_v54 = vsel %vm2389_vm2, %v2275_v50, 0.0  ;;  %v2831_v55 = vsel %vm2389_vm2, %v2339_v51, 0.0  ;;  %v3791_v51 = vld [vmem:[%s4036_s8 + $0x288] sm:$0xff] }
 0x11e   : > { %v2694_v56 = vadd.f32 %v2693_v54, %v2692_v35  ;;  %v2832_v57 = vadd.f32 %v2831_v55, %v2830_v36  ;;  %v2419_v58 = vsel %vm2389_vm2, %v2148_v52, 0.0  ;;  %v2557_v59 = vsel %vm2389_vm2, %v2212_v53, 0.0  ;;  %v3823_v52 = vld [vmem:[%s4036_s8 + $0x388] sm:$0xff] }
 0x11f   : > { %v2420_v60 = vadd.f32 %v2419_v58, %v2418_v39  ;;  %v2558_v61 = vadd.f32 %v2557_v59, %v2556_v40 }
 0x120   : > { %v1850_v62 = vpop.f32.mrf.mxu2  ;;  %v2010_v63 = vpop.f32.mrf.mxu3 }
 0x121   : > { %v1851_v2 = vadd.f32 %v4109_v44, %v1850_v62  ;;  %v2011_v3 = vadd.f32 %v4109_v44, %v2010_v63  ;;  %v1533_v4 = vpop.f32.mrf.mxu0  ;;  %v1693_v5 = vpop.f32.mrf.mxu1 }
 0x122   : > { %v1534_v8 = vadd.f32 %v4109_v44, %v1533_v4  ;;  %v1694_v9 = vadd.f32 %v4109_v44, %v1693_v5 }
 0x123   : > { %v2276_v10 = vmax.f32 %v1851_v2, 0.0  ;;  %v2340_v11 = vmax.f32 %v2011_v3, 0.0 }
 0x124   : > { %v2149_v12 = vmax.f32 %v1534_v8, 0.0  ;;  %v2213_v13 = vmax.f32 %v1694_v9, 0.0  ;;  %3593 = vmatmul.msk.bf16.gmra.mxu0 %vm1095_vm1, %v3726_v0  ;;  %3625 = vmatmul.msk.bf16.gmra.mxu1 %vm1095_vm1, %v3758_v1 }
 0x125   : > { %v2695_v14 = vsel %vm2389_vm2, %v2276_v10, 0.0  ;;  %v2833_v15 = vsel %vm2389_vm2, %v2340_v11, 0.0  ;;  %3657 = vmatmul.msk.bf16.gmra.mxu2 %vm1095_vm1, %v3790_v6  ;;  %3689 = vmatmul.msk.bf16.gmra.mxu3 %vm1095_vm1, %v3822_v7 }
 0x126   : > { %v2696_v16 = vadd.f32 %v2695_v14, %v2694_v56  ;;  %v2834_v17 = vadd.f32 %v2833_v15, %v2832_v57  ;;  %v2421_v18 = vsel %vm2389_vm2, %v2149_v12, 0.0  ;;  %v2559_v19 = vsel %vm2389_vm2, %v2213_v13, 0.0 }
 0x127   : > { %v2422_v20 = vadd.f32 %v2421_v18, %v2420_v60  ;;  %v2560_v21 = vadd.f32 %v2559_v19, %v2558_v61 }
 0x128   : > { %v1853_v22 = vpop.f32.mrf.mxu2  ;;  %v2013_v23 = vpop.f32.mrf.mxu3 }
 0x129   : > { %v1854_v24 = vadd.f32 %v4109_v44, %v1853_v22  ;;  %v2014_v25 = vadd.f32 %v4109_v44, %v2013_v23  ;;  %v1535_v26 = vpop.f32.mrf.mxu0  ;;  %v1695_v27 = vpop.f32.mrf.mxu1 }
 0x12a   : > { %v1536_v28 = vadd.f32 %v4109_v44, %v1535_v26  ;;  %v1696_v29 = vadd.f32 %v4109_v44, %v1695_v27  ;;  %v3760_v26 = vld [vmem:[%s4036_s8 + $0x190] sm:$0xff] }
 0x12b   : > { %v2277_v30 = vmax.f32 %v1854_v24, 0.0  ;;  %v2341_v31 = vmax.f32 %v2014_v25, 0.0  ;;  %v3728_v25 = vld [vmem:[%s4036_s8 + $0x90] sm:$0xff] }
 0x12c   : > { %v2150_v32 = vmax.f32 %v1536_v28, 0.0  ;;  %v2214_v33 = vmax.f32 %v1696_v29, 0.0 }
 0x12d   : > { %v2697_v34 = vsel %vm2389_vm2, %v2277_v30, 0.0  ;;  %v2835_v35 = vsel %vm2389_vm2, %v2341_v31, 0.0  ;;  %v3792_v31 = vld [vmem:[%s4036_s8 + $0x290] sm:$0xff] }
 0x12e   : > { %v2698_v36 = vadd.f32 %v2697_v34, %v2696_v16  ;;  %v2836_v37 = vadd.f32 %v2835_v35, %v2834_v17  ;;  %v2423_v38 = vsel %vm2389_vm2, %v2150_v32, 0.0  ;;  %v2561_v39 = vsel %vm2389_vm2, %v2214_v33, 0.0  ;;  %v3824_v32 = vld [vmem:[%s4036_s8 + $0x390] sm:$0xff] }
 0x12f   : > { %v2424_v40 = vadd.f32 %v2423_v38, %v2422_v20  ;;  %v2562_v41 = vadd.f32 %v2561_v39, %v2560_v21 }
 0x130   : > { %v1855_v42 = vpop.f32.mrf.mxu2  ;;  %v2015_v43 = vpop.f32.mrf.mxu3 }
 0x131   : > { %v1856_v47 = vadd.f32 %v4109_v44, %v1855_v42  ;;  %v2016_v48 = vadd.f32 %v4109_v44, %v2015_v43  ;;  %v1538_v49 = vpop.f32.mrf.mxu0  ;;  %v1698_v50 = vpop.f32.mrf.mxu1 }
 0x132   : > { %v1539_v53 = vadd.f32 %v4109_v44, %v1538_v49  ;;  %v1699_v54 = vadd.f32 %v4109_v44, %v1698_v50 }
 0x133   : > { %v2278_v55 = vmax.f32 %v1856_v47, 0.0  ;;  %v2342_v56 = vmax.f32 %v2016_v48, 0.0 }
 0x134   : > { %v2151_v57 = vmax.f32 %v1539_v53, 0.0  ;;  %v2215_v58 = vmax.f32 %v1699_v54, 0.0  ;;  %3594 = vmatmul.msk.bf16.gmra.mxu0 %vm1095_vm1, %v3727_v45  ;;  %3626 = vmatmul.msk.bf16.gmra.mxu1 %vm1095_vm1, %v3759_v46 }
 0x135   : > { %v2699_v59 = vsel %vm2389_vm2, %v2278_v55, 0.0  ;;  %v2837_v60 = vsel %vm2389_vm2, %v2342_v56, 0.0  ;;  %3658 = vmatmul.msk.bf16.gmra.mxu2 %vm1095_vm1, %v3791_v51  ;;  %3690 = vmatmul.msk.bf16.gmra.mxu3 %vm1095_vm1, %v3823_v52 }
 0x136   : > { %v2700_v61 = vadd.f32 %v2699_v59, %v2698_v36  ;;  %v2838_v62 = vadd.f32 %v2837_v60, %v2836_v37  ;;  %v2425_v63 = vsel %vm2389_vm2, %v2151_v57, 0.0  ;;  %v2563_v0 = vsel %vm2389_vm2, %v2215_v58, 0.0 }
 0x137   : > { %v2426_v1 = vadd.f32 %v2425_v63, %v2424_v40  ;;  %v2564_v2 = vadd.f32 %v2563_v0, %v2562_v41 }
 0x138   : > { %v1858_v3 = vpop.f32.mrf.mxu2  ;;  %v2018_v4 = vpop.f32.mrf.mxu3 }
 0x139   : > { %v1859_v5 = vadd.f32 %v4109_v44, %v1858_v3  ;;  %v2019_v6 = vadd.f32 %v4109_v44, %v2018_v4  ;;  %v1540_v7 = vpop.f32.mrf.mxu0  ;;  %v1700_v8 = vpop.f32.mrf.mxu1 }
 0x13a   : > { %v1541_v9 = vadd.f32 %v4109_v44, %v1540_v7  ;;  %v1701_v10 = vadd.f32 %v4109_v44, %v1700_v8  ;;  %v4372_v7 = vld [vmem:[%s4953_s2] ss:$0 sm:$0xff] }
 0x13b   : > { %v2279_v11 = vmax.f32 %v1859_v5, 0.0  ;;  %v2343_v12 = vmax.f32 %v2019_v6, 0.0  ;;  %v3729_v5 = vld [vmem:[%s4036_s8 + $0x98] sm:$0xff] }
 0x13c   : > { %v2152_v13 = vmax.f32 %v1541_v9, 0.0  ;;  %v2216_v14 = vmax.f32 %v1701_v10, 0.0  ;;  %v3761_v6 = vld [vmem:[%s4036_s8 + $0x198] sm:$0xff] }
 0x13d   : > { %v2701_v15 = vsel %vm2389_vm2, %v2279_v11, 0.0  ;;  %v2839_v16 = vsel %vm2389_vm2, %v2343_v12, 0.0  ;;  %v3793_v12 = vld [vmem:[%s4036_s8 + $0x298] sm:$0xff] }
 0x13e   : > { %v2702_v17 = vadd.f32 %v2701_v15, %v2700_v61  ;;  %v2840_v18 = vadd.f32 %v2839_v16, %v2838_v62  ;;  %v2427_v19 = vsel %vm2389_vm2, %v2152_v13, 0.0  ;;  %v2565_v20 = vsel %vm2389_vm2, %v2216_v14, 0.0  ;;  %v3825_v13 = vld [vmem:[%s4036_s8 + $0x398] sm:$0xff] }
 0x13f   : > { %v2428_v21 = vadd.f32 %v2427_v19, %v2426_v1  ;;  %v2566_v22 = vadd.f32 %v2565_v20, %v2564_v2 }
 0x140   : > { %v1860_v23 = vpop.f32.mrf.mxu2  ;;  %v2020_v24 = vpop.f32.mrf.mxu3 }
 0x141   : > { %v1861_v27 = vadd.f32 %v4109_v44, %v1860_v23  ;;  %v2021_v28 = vadd.f32 %v4109_v44, %v2020_v24  ;;  %v1543_v29 = vpop.f32.mrf.mxu0  ;;  %v1703_v30 = vpop.f32.mrf.mxu1 }
 0x142   : > { %v1544_v33 = vadd.f32 %v4109_v44, %v1543_v29  ;;  %v1704_v34 = vadd.f32 %v4109_v44, %v1703_v30 }
 0x143   : > { %v2280_v35 = vmax.f32 %v1861_v27, 0.0  ;;  %v2344_v36 = vmax.f32 %v2021_v28, 0.0 }
 0x144   : > { %v2153_v37 = vmax.f32 %v1544_v33, 0.0  ;;  %v2217_v38 = vmax.f32 %v1704_v34, 0.0  ;;  %3595 = vmatmul.msk.bf16.gmra.mxu0 %vm1095_vm1, %v3728_v25  ;;  %3627 = vmatmul.msk.bf16.gmra.mxu1 %vm1095_vm1, %v3760_v26 }
 0x145   : > { %v2703_v39 = vsel %vm2389_vm2, %v2280_v35, 0.0  ;;  %v2841_v40 = vsel %vm2389_vm2, %v2344_v36, 0.0  ;;  %3659 = vmatmul.msk.bf16.gmra.mxu2 %vm1095_vm1, %v3792_v31  ;;  %3691 = vmatmul.msk.bf16.gmra.mxu3 %vm1095_vm1, %v3824_v32 }
 0x146   : > { %v2704_v41 = vadd.f32 %v2703_v39, %v2702_v17  ;;  %v2842_v42 = vadd.f32 %v2841_v40, %v2840_v18  ;;  %v2429_v43 = vsel %vm2389_vm2, %v2153_v37, 0.0  ;;  %v2567_v45 = vsel %vm2389_vm2, %v2217_v38, 0.0 }
 0x147   : > { %v2430_v46 = vadd.f32 %v2429_v43, %v2428_v21  ;;  %v2568_v47 = vadd.f32 %v2567_v45, %v2566_v22 }
 0x148   : > { %v1863_v48 = vpop.f32.mrf.mxu2  ;;  %v2023_v49 = vpop.f32.mrf.mxu3 }
 0x149   : > { %v1864_v50 = vadd.f32 %v4109_v44, %v1863_v48  ;;  %v2024_v51 = vadd.f32 %v4109_v44, %v2023_v49  ;;  %v1545_v52 = vpop.f32.mrf.mxu0  ;;  %v1705_v53 = vpop.f32.mrf.mxu1 }
 0x14a   : > { %v1546_v54 = vadd.f32 %v4109_v44, %v1545_v52  ;;  %v1706_v55 = vadd.f32 %v4109_v44, %v1705_v53  ;;  %v3762_v52 = vld [vmem:[%s4036_s8 + $0x1a0] sm:$0xff] }
 0x14b   : > { %v2281_v56 = vmax.f32 %v1864_v50, 0.0  ;;  %v2345_v57 = vmax.f32 %v2024_v51, 0.0  ;;  %v3730_v51 = vld [vmem:[%s4036_s8 + $0xa0] sm:$0xff] }
 0x14c   : > { %v2154_v58 = vmax.f32 %v1546_v54, 0.0  ;;  %v2218_v59 = vmax.f32 %v1706_v55, 0.0 }
 0x14d   : > { %v2705_v60 = vsel %vm2389_vm2, %v2281_v56, 0.0  ;;  %v2843_v61 = vsel %vm2389_vm2, %v2345_v57, 0.0  ;;  %v3794_v57 = vld [vmem:[%s4036_s8 + $0x2a0] sm:$0xff] }
 0x14e   : > { %v2706_v62 = vadd.f32 %v2705_v60, %v2704_v41  ;;  %v2844_v63 = vadd.f32 %v2843_v61, %v2842_v42  ;;  %v2431_v0 = vsel %vm2389_vm2, %v2154_v58, 0.0  ;;  %v2569_v1 = vsel %vm2389_vm2, %v2218_v59, 0.0  ;;  %v3826_v58 = vld [vmem:[%s4036_s8 + $0x3a0] sm:$0xff] }
 0x14f   : > { %v2432_v2 = vadd.f32 %v2431_v0, %v2430_v46  ;;  %v2570_v3 = vadd.f32 %v2569_v1, %v2568_v47 }
 0x150   : > { %v1865_v44 = vpop.f32.mrf.mxu2  ;;  %v2025_v4 = vpop.f32.mrf.mxu3 }
 0x151   : > { %v1866_v8 = vadd.f32 %v4372_v7, %v1865_v44  ;;  %v2026_v9 = vadd.f32 %v4372_v7, %v2025_v4  ;;  %v1548_v10 = vpop.f32.mrf.mxu0  ;;  %v1708_v11 = vpop.f32.mrf.mxu1 }
 0x152   : > { %v1549_v14 = vadd.f32 %v4372_v7, %v1548_v10  ;;  %v1709_v15 = vadd.f32 %v4372_v7, %v1708_v11 }
 0x153   : > { %v2282_v16 = vmax.f32 %v1866_v8, 0.0  ;;  %v2346_v17 = vmax.f32 %v2026_v9, 0.0 }
 0x154   : > { %v2155_v18 = vmax.f32 %v1549_v14, 0.0  ;;  %v2219_v19 = vmax.f32 %v1709_v15, 0.0  ;;  %3596 = vmatmul.msk.bf16.gmra.mxu0 %vm1095_vm1, %v3729_v5  ;;  %3628 = vmatmul.msk.bf16.gmra.mxu1 %vm1095_vm1, %v3761_v6 }
 0x155   : > { %v2707_v20 = vsel %vm2389_vm2, %v2282_v16, 0.0  ;;  %v2845_v21 = vsel %vm2389_vm2, %v2346_v17, 0.0  ;;  %3660 = vmatmul.msk.bf16.gmra.mxu2 %vm1095_vm1, %v3793_v12  ;;  %3692 = vmatmul.msk.bf16.gmra.mxu3 %vm1095_vm1, %v3825_v13 }
 0x156   : > { %v2708_v22 = vadd.f32 %v2707_v20, %v2706_v62  ;;  %v2846_v23 = vadd.f32 %v2845_v21, %v2844_v63  ;;  %v2433_v24 = vsel %vm2389_vm2, %v2155_v18, 0.0  ;;  %v2571_v25 = vsel %vm2389_vm2, %v2219_v19, 0.0 }
 0x157   : > { %v2434_v26 = vadd.f32 %v2433_v24, %v2432_v2  ;;  %v2572_v27 = vadd.f32 %v2571_v25, %v2570_v3 }
 0x158   : > { %v1868_v28 = vpop.f32.mrf.mxu2  ;;  %v2028_v29 = vpop.f32.mrf.mxu3 }
 0x159   : > { %v1869_v30 = vadd.f32 %v4372_v7, %v1868_v28  ;;  %v2029_v31 = vadd.f32 %v4372_v7, %v2028_v29  ;;  %v1550_v32 = vpop.f32.mrf.mxu0  ;;  %v1710_v33 = vpop.f32.mrf.mxu1 }
 0x15a   : > { %v1551_v34 = vadd.f32 %v4372_v7, %v1550_v32  ;;  %v1711_v35 = vadd.f32 %v4372_v7, %v1710_v33  ;;  %v3763_v32 = vld [vmem:[%s4036_s8 + $0x1a8] sm:$0xff] }
 0x15b   : > { %v2283_v36 = vmax.f32 %v1869_v30, 0.0  ;;  %v2347_v37 = vmax.f32 %v2029_v31, 0.0  ;;  %v3731_v31 = vld [vmem:[%s4036_s8 + $0xa8] sm:$0xff] }
 0x15c   : > { %v2156_v38 = vmax.f32 %v1551_v34, 0.0  ;;  %v2220_v39 = vmax.f32 %v1711_v35, 0.0 }
 0x15d   : > { %v2709_v40 = vsel %vm2389_vm2, %v2283_v36, 0.0  ;;  %v2847_v41 = vsel %vm2389_vm2, %v2347_v37, 0.0  ;;  %v3795_v37 = vld [vmem:[%s4036_s8 + $0x2a8] sm:$0xff] }
 0x15e   : > { %v2710_v42 = vadd.f32 %v2709_v40, %v2708_v22  ;;  %v2848_v43 = vadd.f32 %v2847_v41, %v2846_v23  ;;  %v2435_v45 = vsel %vm2389_vm2, %v2156_v38, 0.0  ;;  %v2573_v46 = vsel %vm2389_vm2, %v2220_v39, 0.0  ;;  %v3827_v38 = vld [vmem:[%s4036_s8 + $0x3a8] sm:$0xff] }
 0x15f   : > { %v2436_v47 = vadd.f32 %v2435_v45, %v2434_v26  ;;  %v2574_v48 = vadd.f32 %v2573_v46, %v2572_v27 }
 0x160   : > { %v1870_v49 = vpop.f32.mrf.mxu2  ;;  %v2030_v50 = vpop.f32.mrf.mxu3 }
 0x161   : > { %v1871_v53 = vadd.f32 %v4372_v7, %v1870_v49  ;;  %v2031_v54 = vadd.f32 %v4372_v7, %v2030_v50  ;;  %v1553_v55 = vpop.f32.mrf.mxu0  ;;  %v1713_v56 = vpop.f32.mrf.mxu1 }
 0x162   : > { %v1554_v59 = vadd.f32 %v4372_v7, %v1553_v55  ;;  %v1714_v60 = vadd.f32 %v4372_v7, %v1713_v56 }
 0x163   : > { %v2284_v61 = vmax.f32 %v1871_v53, 0.0  ;;  %v2348_v62 = vmax.f32 %v2031_v54, 0.0 }
 0x164   : > { %v2157_v63 = vmax.f32 %v1554_v59, 0.0  ;;  %v2221_v0 = vmax.f32 %v1714_v60, 0.0  ;;  %3597 = vmatmul.msk.bf16.gmra.mxu0 %vm1095_vm1, %v3730_v51  ;;  %3629 = vmatmul.msk.bf16.gmra.mxu1 %vm1095_vm1, %v3762_v52 }
 0x165   : > { %v2711_v1 = vsel %vm2389_vm2, %v2284_v61, 0.0  ;;  %v2849_v2 = vsel %vm2389_vm2, %v2348_v62, 0.0  ;;  %3661 = vmatmul.msk.bf16.gmra.mxu2 %vm1095_vm1, %v3794_v57  ;;  %3693 = vmatmul.msk.bf16.gmra.mxu3 %vm1095_vm1, %v3826_v58 }
 0x166   : > { %v2712_v3 = vadd.f32 %v2711_v1, %v2710_v42  ;;  %v2850_v44 = vadd.f32 %v2849_v2, %v2848_v43  ;;  %v2437_v4 = vsel %vm2389_vm2, %v2157_v63, 0.0  ;;  %v2575_v5 = vsel %vm2389_vm2, %v2221_v0, 0.0 }
 0x167   : > { %v2438_v6 = vadd.f32 %v2437_v4, %v2436_v47  ;;  %v2576_v8 = vadd.f32 %v2575_v5, %v2574_v48 }
 0x168   : > { %v1873_v9 = vpop.f32.mrf.mxu2  ;;  %v2033_v10 = vpop.f32.mrf.mxu3 }
 0x169   : > { %v1874_v11 = vadd.f32 %v4372_v7, %v1873_v9  ;;  %v2034_v12 = vadd.f32 %v4372_v7, %v2033_v10  ;;  %v1555_v13 = vpop.f32.mrf.mxu0  ;;  %v1715_v14 = vpop.f32.mrf.mxu1 }
 0x16a   : > { %v1556_v15 = vadd.f32 %v4372_v7, %v1555_v13  ;;  %v1716_v16 = vadd.f32 %v4372_v7, %v1715_v14  ;;  %v3764_v13 = vld [vmem:[%s4036_s8 + $0x1b0] sm:$0xff] }
 0x16b   : > { %v2285_v17 = vmax.f32 %v1874_v11, 0.0  ;;  %v2349_v18 = vmax.f32 %v2034_v12, 0.0  ;;  %v3732_v12 = vld [vmem:[%s4036_s8 + $0xb0] sm:$0xff] }
 0x16c   : > { %v2158_v19 = vmax.f32 %v1556_v15, 0.0  ;;  %v2222_v20 = vmax.f32 %v1716_v16, 0.0 }
 0x16d   : > { %v2713_v21 = vsel %vm2389_vm2, %v2285_v17, 0.0  ;;  %v2851_v22 = vsel %vm2389_vm2, %v2349_v18, 0.0  ;;  %v3796_v18 = vld [vmem:[%s4036_s8 + $0x2b0] sm:$0xff] }
 0x16e   : > { %v2714_v23 = vadd.f32 %v2713_v21, %v2712_v3  ;;  %v2852_v24 = vadd.f32 %v2851_v22, %v2850_v44  ;;  %v2439_v25 = vsel %vm2389_vm2, %v2158_v19, 0.0  ;;  %v2577_v26 = vsel %vm2389_vm2, %v2222_v20, 0.0  ;;  %v3828_v19 = vld [vmem:[%s4036_s8 + $0x3b0] sm:$0xff] }
 0x16f   : > { %v2440_v27 = vadd.f32 %v2439_v25, %v2438_v6  ;;  %v2578_v28 = vadd.f32 %v2577_v26, %v2576_v8 }
 0x170   : > { %v1875_v29 = vpop.f32.mrf.mxu2  ;;  %v2035_v30 = vpop.f32.mrf.mxu3 }
 0x171   : > { %v1876_v33 = vadd.f32 %v4372_v7, %v1875_v29  ;;  %v2036_v34 = vadd.f32 %v4372_v7, %v2035_v30  ;;  %v1558_v35 = vpop.f32.mrf.mxu0  ;;  %v1718_v36 = vpop.f32.mrf.mxu1 }
 0x172   : > { %v1559_v39 = vadd.f32 %v4372_v7, %v1558_v35  ;;  %v1719_v40 = vadd.f32 %v4372_v7, %v1718_v36 }
 0x173   : > { %v2286_v41 = vmax.f32 %v1876_v33, 0.0  ;;  %v2350_v42 = vmax.f32 %v2036_v34, 0.0 }
 0x174   : > { %v2159_v43 = vmax.f32 %v1559_v39, 0.0  ;;  %v2223_v45 = vmax.f32 %v1719_v40, 0.0  ;;  %3598 = vmatmul.msk.bf16.gmra.mxu0 %vm1095_vm1, %v3731_v31  ;;  %3630 = vmatmul.msk.bf16.gmra.mxu1 %vm1095_vm1, %v3763_v32 }
 0x175   : > { %v2715_v46 = vsel %vm2389_vm2, %v2286_v41, 0.0  ;;  %v2853_v47 = vsel %vm2389_vm2, %v2350_v42, 0.0  ;;  %3662 = vmatmul.msk.bf16.gmra.mxu2 %vm1095_vm1, %v3795_v37  ;;  %3694 = vmatmul.msk.bf16.gmra.mxu3 %vm1095_vm1, %v3827_v38 }
 0x176   : > { %v2716_v48 = vadd.f32 %v2715_v46, %v2714_v23  ;;  %v2854_v49 = vadd.f32 %v2853_v47, %v2852_v24  ;;  %v2441_v50 = vsel %vm2389_vm2, %v2159_v43, 0.0  ;;  %v2579_v51 = vsel %vm2389_vm2, %v2223_v45, 0.0 }
 0x177   : > { %v2442_v52 = vadd.f32 %v2441_v50, %v2440_v27  ;;  %v2580_v53 = vadd.f32 %v2579_v51, %v2578_v28 }
 0x178   : > { %v1878_v54 = vpop.f32.mrf.mxu2  ;;  %v2038_v55 = vpop.f32.mrf.mxu3 }
 0x179   : > { %v1879_v56 = vadd.f32 %v4372_v7, %v1878_v54  ;;  %v2039_v57 = vadd.f32 %v4372_v7, %v2038_v55  ;;  %v1560_v58 = vpop.f32.mrf.mxu0  ;;  %v1720_v59 = vpop.f32.mrf.mxu1 }
 0x17a   : > { %v1561_v60 = vadd.f32 %v4372_v7, %v1560_v58  ;;  %v1721_v61 = vadd.f32 %v4372_v7, %v1720_v59  ;;  %v3765_v58 = vld [vmem:[%s4036_s8 + $0x1b8] sm:$0xff] }
 0x17b   : > { %v2287_v62 = vmax.f32 %v1879_v56, 0.0  ;;  %v2351_v63 = vmax.f32 %v2039_v57, 0.0  ;;  %v3733_v57 = vld [vmem:[%s4036_s8 + $0xb8] sm:$0xff] }
 0x17c   : > { %v2160_v0 = vmax.f32 %v1561_v60, 0.0  ;;  %v2224_v1 = vmax.f32 %v1721_v61, 0.0 }
 0x17d   : > { %v2717_v2 = vsel %vm2389_vm2, %v2287_v62, 0.0  ;;  %v2855_v3 = vsel %vm2389_vm2, %v2351_v63, 0.0  ;;  %v3797_v63 = vld [vmem:[%s4036_s8 + $0x2b8] sm:$0xff] }
 0x17e   : > { %v2718_v44 = vadd.f32 %v2717_v2, %v2716_v48  ;;  %v2856_v4 = vadd.f32 %v2855_v3, %v2854_v49  ;;  %v2443_v5 = vsel %vm2389_vm2, %v2160_v0, 0.0  ;;  %v2581_v6 = vsel %vm2389_vm2, %v2224_v1, 0.0  ;;  %v3829_v0 = vld [vmem:[%s4036_s8 + $0x3b8] sm:$0xff] }
 0x17f   : > { %v2444_v8 = vadd.f32 %v2443_v5, %v2442_v52  ;;  %v2582_v9 = vadd.f32 %v2581_v6, %v2580_v53 }
 0x180   : > { %v1880_v10 = vpop.f32.mrf.mxu2  ;;  %v2040_v11 = vpop.f32.mrf.mxu3 }
 0x181   : > { %v1881_v14 = vadd.f32 %v4372_v7, %v1880_v10  ;;  %v2041_v15 = vadd.f32 %v4372_v7, %v2040_v11  ;;  %v1563_v16 = vpop.f32.mrf.mxu0  ;;  %v1723_v17 = vpop.f32.mrf.mxu1 }
 0x182   : > { %v1564_v20 = vadd.f32 %v4372_v7, %v1563_v16  ;;  %v1724_v21 = vadd.f32 %v4372_v7, %v1723_v17 }
 0x183   : > { %v2288_v22 = vmax.f32 %v1881_v14, 0.0  ;;  %v2352_v23 = vmax.f32 %v2041_v15, 0.0 }
 0x184   : > { %v2161_v24 = vmax.f32 %v1564_v20, 0.0  ;;  %v2225_v25 = vmax.f32 %v1724_v21, 0.0  ;;  %3599 = vmatmul.msk.bf16.gmra.mxu0 %vm1095_vm1, %v3732_v12  ;;  %3631 = vmatmul.msk.bf16.gmra.mxu1 %vm1095_vm1, %v3764_v13 }
 0x185   : > { %v2719_v26 = vsel %vm2389_vm2, %v2288_v22, 0.0  ;;  %v2857_v27 = vsel %vm2389_vm2, %v2352_v23, 0.0  ;;  %3663 = vmatmul.msk.bf16.gmra.mxu2 %vm1095_vm1, %v3796_v18  ;;  %3695 = vmatmul.msk.bf16.gmra.mxu3 %vm1095_vm1, %v3828_v19 }
 0x186   : > { %v2720_v28 = vadd.f32 %v2719_v26, %v2718_v44  ;;  %v2858_v29 = vadd.f32 %v2857_v27, %v2856_v4  ;;  %v2445_v30 = vsel %vm2389_vm2, %v2161_v24, 0.0  ;;  %v2583_v31 = vsel %vm2389_vm2, %v2225_v25, 0.0 }
 0x187   : > { %v2446_v32 = vadd.f32 %v2445_v30, %v2444_v8  ;;  %v2584_v33 = vadd.f32 %v2583_v31, %v2582_v9 }
 0x188   : > { %v1883_v34 = vpop.f32.mrf.mxu2  ;;  %v2043_v35 = vpop.f32.mrf.mxu3 }
 0x189   : > { %v1884_v36 = vadd.f32 %v4372_v7, %v1883_v34  ;;  %v2044_v37 = vadd.f32 %v4372_v7, %v2043_v35  ;;  %v1565_v38 = vpop.f32.mrf.mxu0  ;;  %v1725_v39 = vpop.f32.mrf.mxu1 }
 0x18a   : > { %v1566_v40 = vadd.f32 %v4372_v7, %v1565_v38  ;;  %v1726_v41 = vadd.f32 %v4372_v7, %v1725_v39  ;;  %v3766_v38 = vld [vmem:[%s4036_s8 + $0x1c0] sm:$0xff] }
 0x18b   : > { %v2289_v42 = vmax.f32 %v1884_v36, 0.0  ;;  %v2353_v43 = vmax.f32 %v2044_v37, 0.0  ;;  %v3734_v37 = vld [vmem:[%s4036_s8 + $0xc0] sm:$0xff] }
 0x18c   : > { %v2162_v45 = vmax.f32 %v1566_v40, 0.0  ;;  %v2226_v46 = vmax.f32 %v1726_v41, 0.0 }
 0x18d   : > { %v2721_v47 = vsel %vm2389_vm2, %v2289_v42, 0.0  ;;  %v2859_v48 = vsel %vm2389_vm2, %v2353_v43, 0.0  ;;  %v3798_v43 = vld [vmem:[%s4036_s8 + $0x2c0] sm:$0xff] }
 0x18e   : > { %v2722_v49 = vadd.f32 %v2721_v47, %v2720_v28  ;;  %v2860_v50 = vadd.f32 %v2859_v48, %v2858_v29  ;;  %v2447_v51 = vsel %vm2389_vm2, %v2162_v45, 0.0  ;;  %v2585_v52 = vsel %vm2389_vm2, %v2226_v46, 0.0  ;;  %v3830_v45 = vld [vmem:[%s4036_s8 + $0x3c0] sm:$0xff] }
 0x18f   : > { %v2448_v53 = vadd.f32 %v2447_v51, %v2446_v32  ;;  %v2586_v54 = vadd.f32 %v2585_v52, %v2584_v33 }
 0x190   : > { %v1885_v55 = vpop.f32.mrf.mxu2  ;;  %v2045_v56 = vpop.f32.mrf.mxu3 }
 0x191   : > { %v1886_v59 = vadd.f32 %v4372_v7, %v1885_v55  ;;  %v2046_v60 = vadd.f32 %v4372_v7, %v2045_v56  ;;  %v1568_v61 = vpop.f32.mrf.mxu0  ;;  %v1728_v62 = vpop.f32.mrf.mxu1 }
 0x192   : > { %v1569_v1 = vadd.f32 %v4372_v7, %v1568_v61  ;;  %v1729_v2 = vadd.f32 %v4372_v7, %v1728_v62 }
 0x193   : > { %v2290_v3 = vmax.f32 %v1886_v59, 0.0  ;;  %v2354_v44 = vmax.f32 %v2046_v60, 0.0 }
 0x194   : > { %v2163_v4 = vmax.f32 %v1569_v1, 0.0  ;;  %v2227_v5 = vmax.f32 %v1729_v2, 0.0  ;;  %3600 = vmatmul.msk.bf16.gmra.mxu0 %vm1095_vm1, %v3733_v57  ;;  %3632 = vmatmul.msk.bf16.gmra.mxu1 %vm1095_vm1, %v3765_v58 }
 0x195   : > { %v2723_v6 = vsel %vm2389_vm2, %v2290_v3, 0.0  ;;  %v2861_v8 = vsel %vm2389_vm2, %v2354_v44, 0.0  ;;  %3664 = vmatmul.msk.bf16.gmra.mxu2 %vm1095_vm1, %v3797_v63  ;;  %3696 = vmatmul.msk.bf16.gmra.mxu3 %vm1095_vm1, %v3829_v0 }
 0x196   : > { %v2724_v9 = vadd.f32 %v2723_v6, %v2722_v49  ;;  %v2862_v10 = vadd.f32 %v2861_v8, %v2860_v50  ;;  %v2449_v11 = vsel %vm2389_vm2, %v2163_v4, 0.0  ;;  %v2587_v12 = vsel %vm2389_vm2, %v2227_v5, 0.0 }
 0x197   : > { %v2450_v13 = vadd.f32 %v2449_v11, %v2448_v53  ;;  %v2588_v14 = vadd.f32 %v2587_v12, %v2586_v54  ;;  %v3767_v11 = vld [vmem:[%s4036_s8 + $0x1c8] sm:$0xff] }
 0x198   : > { %v1888_v15 = vpop.f32.mrf.mxu2  ;;  %v2048_v16 = vpop.f32.mrf.mxu3 }
 0x199   : > { %v1889_v17 = vadd.f32 %v4372_v7, %v1888_v15  ;;  %v2049_v18 = vadd.f32 %v4372_v7, %v2048_v16  ;;  %v1570_v19 = vpop.f32.mrf.mxu0  ;;  %v1730_v20 = vpop.f32.mrf.mxu1 }
 0x19a   : > { %v1571_v21 = vadd.f32 %v4372_v7, %v1570_v19  ;;  %v1731_v22 = vadd.f32 %v4372_v7, %v1730_v20  ;;  %v3831_v19 = vld [vmem:[%s4036_s8 + $0x3c8] sm:$0xff] }
 0x19b   : > { %v2291_v23 = vmax.f32 %v1889_v17, 0.0  ;;  %v2355_v24 = vmax.f32 %v2049_v18, 0.0  ;;  %v3799_v18 = vld [vmem:[%s4036_s8 + $0x2c8] sm:$0xff] }
 0x19c   : > { %v2164_v25 = vmax.f32 %v1571_v21, 0.0  ;;  %v2228_v26 = vmax.f32 %v1731_v22, 0.0 }
 0x19d   : > { %v2725_v27 = vsel %vm2389_vm2, %v2291_v23, 0.0  ;;  %v2863_v28 = vsel %vm2389_vm2, %v2355_v24, 0.0 }
 0x19e   : > { %v2726_v29 = vadd.f32 %v2725_v27, %v2724_v9  ;;  %v2864_v30 = vadd.f32 %v2863_v28, %v2862_v10  ;;  %v2451_v31 = vsel %vm2389_vm2, %v2164_v25, 0.0  ;;  %v2589_v32 = vsel %vm2389_vm2, %v2228_v26, 0.0  ;;  %v3735_v10 = vld [vmem:[%s4036_s8 + $0xc8] sm:$0xff] }
 0x19f   : > { %v4492_v33 = vadd.f32 %v2451_v31, %v2450_v13  ;;  %v4494_v34 = vadd.f32 %v2589_v32, %v2588_v14 }
 0x1a0   : > { %v1890_v35 = vpop.f32.mrf.mxu2  ;;  %v2050_v36 = vpop.f32.mrf.mxu3 }
 0x1a1   : > { %v1891_v39 = vadd.f32 %v4372_v7, %v1890_v35  ;;  %v2051_v40 = vadd.f32 %v4372_v7, %v2050_v36  ;;  %v1573_v41 = vpop.f32.mrf.mxu0  ;;  %v1733_v42 = vpop.f32.mrf.mxu1 }
 0x1a2   : > { %v1574_v52 = vadd.f32 %v4372_v7, %v1573_v41  ;;  %v1734_v53 = vadd.f32 %v4372_v7, %v1733_v42 }
 0x1a3   : > { %v2292_v46 = vmax.f32 %v1891_v39, 0.0  ;;  %v2356_v47 = vmax.f32 %v2051_v40, 0.0 }
 0x1a4   : > { %3601 = vmatmul.msk.bf16.gmra.mxu0 %vm1095_vm1, %v3734_v37  ;;  %3633 = vmatmul.msk.bf16.gmra.mxu1 %vm1095_vm1, %v3766_v38  ;;  %v2165_v58 = vmax.f32 %v1574_v52, 0.0  ;;  %v2229_v59 = vmax.f32 %v1734_v53, 0.0 }
 0x1a5   : > { %v2727_v48 = vsel %vm2389_vm2, %v2292_v46, 0.0  ;;  %v2865_v49 = vsel %vm2389_vm2, %v2356_v47, 0.0  ;;  %3665 = vmatmul.msk.bf16.gmra.mxu2 %vm1095_vm1, %v3798_v43  ;;  %3697 = vmatmul.msk.bf16.gmra.mxu3 %vm1095_vm1, %v3830_v45 }
 0x1a6   : > { %v4508_v50 = vadd.f32 %v2727_v48, %v2726_v29  ;;  %v4510_v51 = vadd.f32 %v2865_v49, %v2864_v30  ;;  %v2459_v2 = vsel %vm2389_vm2, %v2165_v58, 0.0  ;;  %v2597_v3 = vsel %vm2389_vm2, %v2229_v59, 0.0 }
 0x1a8   : > { %v1893_v54 = vpop.f32.mrf.mxu2  ;;  %v2053_v55 = vpop.f32.mrf.mxu3 }
 0x1a9   : > { %v1575_v56 = vpop.f32.mrf.mxu0  ;;  %v1735_v57 = vpop.f32.mrf.mxu1  ;;  %v1894_v0 = vadd.f32 %v4372_v7, %v1893_v54  ;;  %v2054_v1 = vadd.f32 %v4372_v7, %v2053_v55 }
 0x1aa   : > { %v1576_v60 = vadd.f32 %v4372_v7, %v1575_v56  ;;  %v1736_v61 = vadd.f32 %v4372_v7, %v1735_v57 }
 0x1ab   : > { %v2293_v12 = vmax.f32 %v1894_v0, 0.0  ;;  %v2357_v13 = vmax.f32 %v2054_v1, 0.0  ;;  %v3768_v0 = vld [vmem:[%s4036_s8 + $0x1d0] sm:$0xff] }
 0x1ac   : > { %v2166_v62 = vmax.f32 %v1576_v60, 0.0  ;;  %v2230_v63 = vmax.f32 %v1736_v61, 0.0 }
 0x1ad   : > { %v2735_v26 = vsel %vm2389_vm2, %v2293_v12, 0.0  ;;  %v2873_v27 = vsel %vm2389_vm2, %v2357_v13, 0.0 }
 0x1ae   : > { %v2460_v44 = vsel %vm2389_vm2, %v2166_v62, 0.0  ;;  %v2598_v4 = vsel %vm2389_vm2, %v2230_v63, 0.0  ;;  %v3736_v63 = vld [vmem:[%s4036_s8 + $0xd0] sm:$0xff] }
 0x1af   : > { %v2461_v5 = vadd.f32 %v2460_v44, %v2459_v2  ;;  %v2599_v6 = vadd.f32 %v2598_v4, %v2597_v3  ;;  %v3800_v4 = vld [vmem:[%s4036_s8 + $0x2d0] sm:$0xff] }
 0x1b0   : > { %v1895_v8 = vpop.f32.mrf.mxu2  ;;  %v2055_v9 = vpop.f32.mrf.mxu3 }
 0x1b1   : > { %v1896_v14 = vadd.f32 %v4372_v7, %v1895_v8  ;;  %v2056_v15 = vadd.f32 %v4372_v7, %v2055_v9  ;;  %v1578_v16 = vpop.f32.mrf.mxu0  ;;  %v1738_v17 = vpop.f32.mrf.mxu1 }
 0x1b2   : > { %v1579_v20 = vadd.f32 %v4372_v7, %v1578_v16  ;;  %v1739_v21 = vadd.f32 %v4372_v7, %v1738_v17 }
 0x1b3   : > { %v2294_v22 = vmax.f32 %v1896_v14, 0.0  ;;  %v2358_v23 = vmax.f32 %v2056_v15, 0.0 }
 0x1b4   : > { %v2167_v24 = vmax.f32 %v1579_v20, 0.0  ;;  %v2231_v25 = vmax.f32 %v1739_v21, 0.0  ;;  %3602 = vmatmul.msk.bf16.gmra.mxu0 %vm1095_vm1, %v3735_v10  ;;  %3634 = vmatmul.msk.bf16.gmra.mxu1 %vm1095_vm1, %v3767_v11 }
 0x1b5   : > { %v2736_v28 = vsel %vm2389_vm2, %v2294_v22, 0.0  ;;  %v2874_v29 = vsel %vm2389_vm2, %v2358_v23, 0.0  ;;  %3666 = vmatmul.msk.bf16.gmra.mxu2 %vm1095_vm1, %v3799_v18  ;;  %3698 = vmatmul.msk.bf16.gmra.mxu3 %vm1095_vm1, %v3831_v19 }
 0x1b6   : > { %v2737_v30 = vadd.f32 %v2736_v28, %v2735_v26  ;;  %v2875_v31 = vadd.f32 %v2874_v29, %v2873_v27  ;;  %v2462_v32 = vsel %vm2389_vm2, %v2167_v24, 0.0  ;;  %v2600_v35 = vsel %vm2389_vm2, %v2231_v25, 0.0 }
 0x1b7   : > { %v2463_v36 = vadd.f32 %v2462_v32, %v2461_v5  ;;  %v2601_v37 = vadd.f32 %v2600_v35, %v2599_v6  ;;  %v3832_v5 = vld [vmem:[%s4036_s8 + $0x3d0] sm:$0xff] }
 0x1b8   : > { %v1898_v38 = vpop.f32.mrf.mxu2  ;;  %v2058_v39 = vpop.f32.mrf.mxu3 }
 0x1b9   : > { %v1899_v40 = vadd.f32 %v4372_v7, %v1898_v38  ;;  %v2059_v41 = vadd.f32 %v4372_v7, %v2058_v39  ;;  %v1580_v42 = vpop.f32.mrf.mxu0  ;;  %v1740_v43 = vpop.f32.mrf.mxu1 }
 0x1ba   : > { %v1581_v45 = vadd.f32 %v4372_v7, %v1580_v42  ;;  %v1741_v46 = vadd.f32 %v4372_v7, %v1740_v43 }
 0x1bb   : > { %v2295_v47 = vmax.f32 %v1899_v40, 0.0  ;;  %v2359_v48 = vmax.f32 %v2059_v41, 0.0 }
 0x1bc   : > { %v2168_v49 = vmax.f32 %v1581_v45, 0.0  ;;  %v2232_v52 = vmax.f32 %v1741_v46, 0.0  ;;  %v3737_v46 = vld [vmem:[%s4036_s8 + $0xd8] sm:$0xff] }
 0x1bd   : > { %v2738_v53 = vsel %vm2389_vm2, %v2295_v47, 0.0  ;;  %v2876_v54 = vsel %vm2389_vm2, %v2359_v48, 0.0  ;;  %v3769_v47 = vld [vmem:[%s4036_s8 + $0x1d8] sm:$0xff] }
 0x1be   : > { %v2739_v55 = vadd.f32 %v2738_v53, %v2737_v30  ;;  %v2877_v56 = vadd.f32 %v2876_v54, %v2875_v31  ;;  %v2464_v57 = vsel %vm2389_vm2, %v2168_v49, 0.0  ;;  %v2602_v58 = vsel %vm2389_vm2, %v2232_v52, 0.0  ;;  %v3801_v54 = vld [vmem:[%s4036_s8 + $0x2d8] sm:$0xff] }
 0x1bf   : > { %v2465_v59 = vadd.f32 %v2464_v57, %v2463_v36  ;;  %v2603_v60 = vadd.f32 %v2602_v58, %v2601_v37 }
 0x1c0   : > { %v1900_v61 = vpop.f32.mrf.mxu2  ;;  %v2060_v62 = vpop.f32.mrf.mxu3 }
 0x1c1   : > { %v1901_v1 = vadd.f32 %v4372_v7, %v1900_v61  ;;  %v2061_v2 = vadd.f32 %v4372_v7, %v2060_v62  ;;  %v1583_v3 = vpop.f32.mrf.mxu0  ;;  %v1743_v44 = vpop.f32.mrf.mxu1 }
 0x1c2   : > { %v1584_v6 = vadd.f32 %v4372_v7, %v1583_v3  ;;  %v1744_v8 = vadd.f32 %v4372_v7, %v1743_v44 }
 0x1c3   : > { %v2296_v9 = vmax.f32 %v1901_v1, 0.0  ;;  %v2360_v10 = vmax.f32 %v2061_v2, 0.0 }
 0x1c4   : > { %v2169_v11 = vmax.f32 %v1584_v6, 0.0  ;;  %v2233_v12 = vmax.f32 %v1744_v8, 0.0  ;;  %3603 = vmatmul.msk.bf16.gmra.mxu0 %vm1095_vm1, %v3736_v63  ;;  %3635 = vmatmul.msk.bf16.gmra.mxu1 %vm1095_vm1, %v3768_v0 }
 0x1c5   : > { %v2740_v13 = vsel %vm2389_vm2, %v2296_v9, 0.0  ;;  %v2878_v14 = vsel %vm2389_vm2, %v2360_v10, 0.0  ;;  %3667 = vmatmul.msk.bf16.gmra.mxu2 %vm1095_vm1, %v3800_v4  ;;  %3699 = vmatmul.msk.bf16.gmra.mxu3 %vm1095_vm1, %v3832_v5 }
 0x1c6   : > { %v2741_v15 = vadd.f32 %v2740_v13, %v2739_v55  ;;  %v2879_v16 = vadd.f32 %v2878_v14, %v2877_v56  ;;  %v2466_v17 = vsel %vm2389_vm2, %v2169_v11, 0.0  ;;  %v2604_v18 = vsel %vm2389_vm2, %v2233_v12, 0.0  ;;  %v3833_v55 = vld [vmem:[%s4036_s8 + $0x3d8] sm:$0xff] }
 0x1c7   : > { %v2467_v19 = vadd.f32 %v2466_v17, %v2465_v59  ;;  %v2605_v20 = vadd.f32 %v2604_v18, %v2603_v60 }
 0x1c8   : > { %v1903_v21 = vpop.f32.mrf.mxu2  ;;  %v2063_v22 = vpop.f32.mrf.mxu3 }
 0x1c9   : > { %v1904_v23 = vadd.f32 %v4372_v7, %v1903_v21  ;;  %v2064_v24 = vadd.f32 %v4372_v7, %v2063_v22  ;;  %v1585_v25 = vpop.f32.mrf.mxu0  ;;  %v1745_v26 = vpop.f32.mrf.mxu1 }
 0x1ca   : > { %v1586_v27 = vadd.f32 %v4372_v7, %v1585_v25  ;;  %v1746_v28 = vadd.f32 %v4372_v7, %v1745_v26 }
 0x1cb   : > { %v2297_v29 = vmax.f32 %v1904_v23, 0.0  ;;  %v2361_v30 = vmax.f32 %v2064_v24, 0.0 }
 0x1cc   : > { %v2170_v31 = vmax.f32 %v1586_v27, 0.0  ;;  %v2234_v32 = vmax.f32 %v1746_v28, 0.0  ;;  %v3738_v28 = vld [vmem:[%s4036_s8 + $0xe0] sm:$0xff] }
 0x1cd   : > { %v2742_v35 = vsel %vm2389_vm2, %v2297_v29, 0.0  ;;  %v2880_v36 = vsel %vm2389_vm2, %v2361_v30, 0.0  ;;  %v3770_v29 = vld [vmem:[%s4036_s8 + $0x1e0] sm:$0xff] }
 0x1ce   : > { %v2743_v37 = vadd.f32 %v2742_v35, %v2741_v15  ;;  %v2881_v38 = vadd.f32 %v2880_v36, %v2879_v16  ;;  %v2468_v39 = vsel %vm2389_vm2, %v2170_v31, 0.0  ;;  %v2606_v40 = vsel %vm2389_vm2, %v2234_v32, 0.0  ;;  %v3802_v36 = vld [vmem:[%s4036_s8 + $0x2e0] sm:$0xff] }
 0x1cf   : > { %v2469_v41 = vadd.f32 %v2468_v39, %v2467_v19  ;;  %v2607_v42 = vadd.f32 %v2606_v40, %v2605_v20 }
 0x1d0   : > { %v1905_v43 = vpop.f32.mrf.mxu2  ;;  %v2065_v45 = vpop.f32.mrf.mxu3 }
 0x1d1   : > { %v1906_v48 = vadd.f32 %v4372_v7, %v1905_v43  ;;  %v2066_v49 = vadd.f32 %v4372_v7, %v2065_v45  ;;  %v1588_v52 = vpop.f32.mrf.mxu0  ;;  %v1748_v53 = vpop.f32.mrf.mxu1 }
 0x1d2   : > { %v1589_v56 = vadd.f32 %v4372_v7, %v1588_v52  ;;  %v1749_v57 = vadd.f32 %v4372_v7, %v1748_v53 }
 0x1d3   : > { %v2298_v58 = vmax.f32 %v1906_v48, 0.0  ;;  %v2362_v59 = vmax.f32 %v2066_v49, 0.0 }
 0x1d4   : > { %v2171_v60 = vmax.f32 %v1589_v56, 0.0  ;;  %v2235_v61 = vmax.f32 %v1749_v57, 0.0  ;;  %3604 = vmatmul.msk.bf16.gmra.mxu0 %vm1095_vm1, %v3737_v46  ;;  %3636 = vmatmul.msk.bf16.gmra.mxu1 %vm1095_vm1, %v3769_v47 }
 0x1d5   : > { %v2744_v62 = vsel %vm2389_vm2, %v2298_v58, 0.0  ;;  %v2882_v63 = vsel %vm2389_vm2, %v2362_v59, 0.0  ;;  %3668 = vmatmul.msk.bf16.gmra.mxu2 %vm1095_vm1, %v3801_v54  ;;  %3700 = vmatmul.msk.bf16.gmra.mxu3 %vm1095_vm1, %v3833_v55 }
 0x1d6   : > { %v2745_v0 = vadd.f32 %v2744_v62, %v2743_v37  ;;  %v2883_v1 = vadd.f32 %v2882_v63, %v2881_v38  ;;  %v2470_v2 = vsel %vm2389_vm2, %v2171_v60, 0.0  ;;  %v2608_v3 = vsel %vm2389_vm2, %v2235_v61, 0.0  ;;  %v3834_v37 = vld [vmem:[%s4036_s8 + $0x3e0] sm:$0xff] }
 0x1d7   : > { %v2471_v44 = vadd.f32 %v2470_v2, %v2469_v41  ;;  %v2609_v4 = vadd.f32 %v2608_v3, %v2607_v42 }
 0x1d8   : > { %v1908_v5 = vpop.f32.mrf.mxu2  ;;  %v2068_v6 = vpop.f32.mrf.mxu3 }
 0x1d9   : > { %v1909_v8 = vadd.f32 %v4372_v7, %v1908_v5  ;;  %v2069_v9 = vadd.f32 %v4372_v7, %v2068_v6  ;;  %v1590_v10 = vpop.f32.mrf.mxu0  ;;  %v1750_v11 = vpop.f32.mrf.mxu1 }
 0x1da   : > { %v1591_v12 = vadd.f32 %v4372_v7, %v1590_v10  ;;  %v1751_v13 = vadd.f32 %v4372_v7, %v1750_v11 }
 0x1db   : > { %v2299_v14 = vmax.f32 %v1909_v8, 0.0  ;;  %v2363_v15 = vmax.f32 %v2069_v9, 0.0 }
 0x1dc   : > { %v2172_v16 = vmax.f32 %v1591_v12, 0.0  ;;  %v2236_v17 = vmax.f32 %v1751_v13, 0.0  ;;  %v3739_v13 = vld [vmem:[%s4036_s8 + $0xe8] sm:$0xff] }
 0x1dd   : > { %v2746_v18 = vsel %vm2389_vm2, %v2299_v14, 0.0  ;;  %v2884_v19 = vsel %vm2389_vm2, %v2363_v15, 0.0  ;;  %v3771_v14 = vld [vmem:[%s4036_s8 + $0x1e8] sm:$0xff] }
 0x1de   : > { %v2747_v20 = vadd.f32 %v2746_v18, %v2745_v0  ;;  %v2885_v21 = vadd.f32 %v2884_v19, %v2883_v1  ;;  %v2472_v22 = vsel %vm2389_vm2, %v2172_v16, 0.0  ;;  %v2610_v23 = vsel %vm2389_vm2, %v2236_v17, 0.0  ;;  %v3803_v19 = vld [vmem:[%s4036_s8 + $0x2e8] sm:$0xff] }
 0x1df   : > { %v2473_v24 = vadd.f32 %v2472_v22, %v2471_v44  ;;  %v2611_v25 = vadd.f32 %v2610_v23, %v2609_v4 }
 0x1e0   : > { %v1910_v26 = vpop.f32.mrf.mxu2  ;;  %v2070_v27 = vpop.f32.mrf.mxu3 }
 0x1e1   : > { %v1911_v30 = vadd.f32 %v4372_v7, %v1910_v26  ;;  %v2071_v31 = vadd.f32 %v4372_v7, %v2070_v27  ;;  %v1593_v32 = vpop.f32.mrf.mxu0  ;;  %v1753_v35 = vpop.f32.mrf.mxu1 }
 0x1e2   : > { %v1594_v38 = vadd.f32 %v4372_v7, %v1593_v32  ;;  %v1754_v39 = vadd.f32 %v4372_v7, %v1753_v35 }
 0x1e3   : > { %v2300_v40 = vmax.f32 %v1911_v30, 0.0  ;;  %v2364_v41 = vmax.f32 %v2071_v31, 0.0 }
 0x1e4   : > { %v2173_v42 = vmax.f32 %v1594_v38, 0.0  ;;  %v2237_v43 = vmax.f32 %v1754_v39, 0.0  ;;  %3605 = vmatmul.msk.bf16.gmra.mxu0 %vm1095_vm1, %v3738_v28  ;;  %3637 = vmatmul.msk.bf16.gmra.mxu1 %vm1095_vm1, %v3770_v29 }
 0x1e5   : > { %v2748_v45 = vsel %vm2389_vm2, %v2300_v40, 0.0  ;;  %v2886_v46 = vsel %vm2389_vm2, %v2364_v41, 0.0  ;;  %3669 = vmatmul.msk.bf16.gmra.mxu2 %vm1095_vm1, %v3802_v36  ;;  %3701 = vmatmul.msk.bf16.gmra.mxu3 %vm1095_vm1, %v3834_v37 }
 0x1e6   : > { %v2749_v47 = vadd.f32 %v2748_v45, %v2747_v20  ;;  %v2887_v48 = vadd.f32 %v2886_v46, %v2885_v21  ;;  %v2474_v49 = vsel %vm2389_vm2, %v2173_v42, 0.0  ;;  %v2612_v52 = vsel %vm2389_vm2, %v2237_v43, 0.0  ;;  %v3835_v20 = vld [vmem:[%s4036_s8 + $0x3e8] sm:$0xff] }
 0x1e7   : > { %v2475_v53 = vadd.f32 %v2474_v49, %v2473_v24  ;;  %v2613_v54 = vadd.f32 %v2612_v52, %v2611_v25 }
 0x1e8   : > { %v1913_v55 = vpop.f32.mrf.mxu2  ;;  %v2073_v56 = vpop.f32.mrf.mxu3 }
 0x1e9   : > { %v1914_v57 = vadd.f32 %v4372_v7, %v1913_v55  ;;  %v2074_v58 = vadd.f32 %v4372_v7, %v2073_v56  ;;  %v1595_v59 = vpop.f32.mrf.mxu0  ;;  %v1755_v60 = vpop.f32.mrf.mxu1 }
 0x1ea   : > { %v1596_v61 = vadd.f32 %v4372_v7, %v1595_v59  ;;  %v1756_v62 = vadd.f32 %v4372_v7, %v1755_v60 }
 0x1eb   : > { %v2301_v63 = vmax.f32 %v1914_v57, 0.0  ;;  %v2365_v0 = vmax.f32 %v2074_v58, 0.0 }
 0x1ec   : > { %v2174_v1 = vmax.f32 %v1596_v61, 0.0  ;;  %v2238_v2 = vmax.f32 %v1756_v62, 0.0  ;;  %v3740_v61 = vld [vmem:[%s4036_s8 + $0xf0] sm:$0xff] }
 0x1ed   : > { %v2750_v3 = vsel %vm2389_vm2, %v2301_v63, 0.0  ;;  %v2888_v44 = vsel %vm2389_vm2, %v2365_v0, 0.0  ;;  %v3772_v62 = vld [vmem:[%s4036_s8 + $0x1f0] sm:$0xff]  ;;  %v4649_v63 = vld [vmem:[%s4953_s2] ss:$0 sm:$0xff] }
 0x1ee   : > { %v2751_v4 = vadd.f32 %v2750_v3, %v2749_v47  ;;  %v2889_v5 = vadd.f32 %v2888_v44, %v2887_v48  ;;  %v2476_v6 = vsel %vm2389_vm2, %v2174_v1, 0.0  ;;  %v2614_v8 = vsel %vm2389_vm2, %v2238_v2, 0.0  ;;  %v3804_v44 = vld [vmem:[%s4036_s8 + $0x2f0] sm:$0xff] }
 0x1ef   : > { %v2477_v9 = vadd.f32 %v2476_v6, %v2475_v53  ;;  %v2615_v10 = vadd.f32 %v2614_v8, %v2613_v54 }
 0x1f0   : > { %v1915_v11 = vpop.f32.mrf.mxu2  ;;  %v2075_v12 = vpop.f32.mrf.mxu3 }
 0x1f1   : > { %v1916_v15 = vadd.f32 %v4372_v7, %v1915_v11  ;;  %v2076_v16 = vadd.f32 %v4372_v7, %v2075_v12  ;;  %v1598_v17 = vpop.f32.mrf.mxu0  ;;  %v1758_v18 = vpop.f32.mrf.mxu1 }
 0x1f2   : > { %v1599_v21 = vadd.f32 %v4372_v7, %v1598_v17  ;;  %v1759_v22 = vadd.f32 %v4372_v7, %v1758_v18 }
 0x1f3   : > { %v2302_v23 = vmax.f32 %v1916_v15, 0.0  ;;  %v2366_v24 = vmax.f32 %v2076_v16, 0.0 }
 0x1f4   : > { %v2175_v25 = vmax.f32 %v1599_v21, 0.0  ;;  %v2239_v26 = vmax.f32 %v1759_v22, 0.0  ;;  %3606 = vmatmul.msk.bf16.gmra.mxu0 %vm1095_vm1, %v3739_v13  ;;  %3638 = vmatmul.msk.bf16.gmra.mxu1 %vm1095_vm1, %v3771_v14 }
 0x1f5   : > { %v2752_v27 = vsel %vm2389_vm2, %v2302_v23, 0.0  ;;  %v2890_v28 = vsel %vm2389_vm2, %v2366_v24, 0.0  ;;  %3670 = vmatmul.msk.bf16.gmra.mxu2 %vm1095_vm1, %v3803_v19  ;;  %3702 = vmatmul.msk.bf16.gmra.mxu3 %vm1095_vm1, %v3835_v20 }
 0x1f6   : > { %v2753_v29 = vadd.f32 %v2752_v27, %v2751_v4  ;;  %v2891_v30 = vadd.f32 %v2890_v28, %v2889_v5  ;;  %v2478_v31 = vsel %vm2389_vm2, %v2175_v25, 0.0  ;;  %v2616_v32 = vsel %vm2389_vm2, %v2239_v26, 0.0  ;;  %v3836_v4 = vld [vmem:[%s4036_s8 + $0x3f0] sm:$0xff] }
 0x1f7   : > { %v2479_v35 = vadd.f32 %v2478_v31, %v2477_v9  ;;  %v2617_v36 = vadd.f32 %v2616_v32, %v2615_v10 }
 0x1f8   : > { %v1918_v37 = vpop.f32.mrf.mxu2  ;;  %v2078_v38 = vpop.f32.mrf.mxu3 }
 0x1f9   : > { %v1919_v39 = vadd.f32 %v4372_v7, %v1918_v37  ;;  %v2079_v40 = vadd.f32 %v4372_v7, %v2078_v38  ;;  %v1600_v41 = vpop.f32.mrf.mxu0  ;;  %v1760_v42 = vpop.f32.mrf.mxu1 }
 0x1fa   : > { %v1601_v43 = vadd.f32 %v4372_v7, %v1600_v41  ;;  %v1761_v45 = vadd.f32 %v4372_v7, %v1760_v42 }
 0x1fb   : > { %v2303_v46 = vmax.f32 %v1919_v39, 0.0  ;;  %v2367_v47 = vmax.f32 %v2079_v40, 0.0 }
 0x1fc   : > { %v2176_v48 = vmax.f32 %v1601_v43, 0.0  ;;  %v2240_v49 = vmax.f32 %v1761_v45, 0.0  ;;  %v3741_v45 = vld [vmem:[%s4036_s8 + $0xf8] sm:$0xff] }
 0x1fd   : > { %v2754_v52 = vsel %vm2389_vm2, %v2303_v46, 0.0  ;;  %v2892_v53 = vsel %vm2389_vm2, %v2367_v47, 0.0  ;;  %v3773_v46 = vld [vmem:[%s4036_s8 + $0x1f8] sm:$0xff] }
 0x1fe   : > { %v2755_v54 = vadd.f32 %v2754_v52, %v2753_v29  ;;  %v2893_v55 = vadd.f32 %v2892_v53, %v2891_v30  ;;  %v2480_v56 = vsel %vm2389_vm2, %v2176_v48, 0.0  ;;  %v2618_v57 = vsel %vm2389_vm2, %v2240_v49, 0.0  ;;  %v3805_v53 = vld [vmem:[%s4036_s8 + $0x2f8] sm:$0xff] }
 0x1ff   : > { %v2481_v58 = vadd.f32 %v2480_v56, %v2479_v35  ;;  %v2619_v59 = vadd.f32 %v2618_v57, %v2617_v36 }
 0x200   : > { %v1920_v7 = vpop.f32.mrf.mxu2  ;;  %v2080_v60 = vpop.f32.mrf.mxu3 }
 0x201   : > { %v1921_v0 = vadd.f32 %v4649_v63, %v1920_v7  ;;  %v2081_v1 = vadd.f32 %v4649_v63, %v2080_v60  ;;  %v1603_v2 = vpop.f32.mrf.mxu0  ;;  %v1763_v3 = vpop.f32.mrf.mxu1 }
 0x202   : > { %v1604_v5 = vadd.f32 %v4649_v63, %v1603_v2  ;;  %v1764_v6 = vadd.f32 %v4649_v63, %v1763_v3 }
 0x203   : > { %v2304_v8 = vmax.f32 %v1921_v0, 0.0  ;;  %v2368_v9 = vmax.f32 %v2081_v1, 0.0 }
 0x204   : > { %v2177_v10 = vmax.f32 %v1604_v5, 0.0  ;;  %v2241_v11 = vmax.f32 %v1764_v6, 0.0  ;;  %3607 = vmatmul.msk.bf16.gmra.mxu0 %vm1095_vm1, %v3740_v61  ;;  %3639 = vmatmul.msk.bf16.gmra.mxu1 %vm1095_vm1, %v3772_v62 }
 0x205   : > { %v2756_v12 = vsel %vm2389_vm2, %v2304_v8, 0.0  ;;  %v2894_v13 = vsel %vm2389_vm2, %v2368_v9, 0.0  ;;  %3671 = vmatmul.msk.bf16.gmra.mxu2 %vm1095_vm1, %v3804_v44  ;;  %3703 = vmatmul.msk.bf16.gmra.mxu3 %vm1095_vm1, %v3836_v4 }
 0x206   : > { %v2757_v14 = vadd.f32 %v2756_v12, %v2755_v54  ;;  %v2895_v15 = vadd.f32 %v2894_v13, %v2893_v55  ;;  %v2482_v16 = vsel %vm2389_vm2, %v2177_v10, 0.0  ;;  %v2620_v17 = vsel %vm2389_vm2, %v2241_v11, 0.0  ;;  %v3837_v54 = vld [vmem:[%s4036_s8 + $0x3f8] sm:$0xff] }
 0x207   : > { %v2483_v18 = vadd.f32 %v2482_v16, %v2481_v58  ;;  %v2621_v19 = vadd.f32 %v2620_v17, %v2619_v59 }
 0x208   : > { %v1923_v20 = vpop.f32.mrf.mxu2  ;;  %v2083_v21 = vpop.f32.mrf.mxu3 }
 0x209   : > { %v1924_v22 = vadd.f32 %v4649_v63, %v1923_v20  ;;  %v2084_v23 = vadd.f32 %v4649_v63, %v2083_v21  ;;  %v1605_v24 = vpop.f32.mrf.mxu0  ;;  %v1765_v25 = vpop.f32.mrf.mxu1 }
 0x20a   : > { %v1606_v26 = vadd.f32 %v4649_v63, %v1605_v24  ;;  %v1766_v27 = vadd.f32 %v4649_v63, %v1765_v25 }
 0x20b   : > { %v2305_v28 = vmax.f32 %v1924_v22, 0.0  ;;  %v2369_v29 = vmax.f32 %v2084_v23, 0.0 }
 0x20c   : > { %v2178_v30 = vmax.f32 %v1606_v26, 0.0  ;;  %v2242_v31 = vmax.f32 %v1766_v27, 0.0 }
 0x20d   : > { %v2758_v32 = vsel %vm2389_vm2, %v2305_v28, 0.0  ;;  %v2896_v35 = vsel %vm2389_vm2, %v2369_v29, 0.0 }
 0x20e   : > { %v2759_v36 = vadd.f32 %v2758_v32, %v2757_v14  ;;  %v2897_v37 = vadd.f32 %v2896_v35, %v2895_v15  ;;  %v2484_v38 = vsel %vm2389_vm2, %v2178_v30, 0.0  ;;  %v2622_v39 = vsel %vm2389_vm2, %v2242_v31, 0.0 }
 0x20f   : > { %v2485_v40 = vadd.f32 %v2484_v38, %v2483_v18  ;;  %v2623_v41 = vadd.f32 %v2622_v39, %v2621_v19 }
 0x210   : > { %v1925_v42 = vpop.f32.mrf.mxu2  ;;  %v2085_v43 = vpop.f32.mrf.mxu3 }
 0x211   : > { %v1926_v47 = vadd.f32 %v4649_v63, %v1925_v42  ;;  %v2086_v48 = vadd.f32 %v4649_v63, %v2085_v43  ;;  %v1608_v49 = vpop.f32.mrf.mxu0  ;;  %v1768_v52 = vpop.f32.mrf.mxu1 }
 0x212   : > { %v1609_v55 = vadd.f32 %v4649_v63, %v1608_v49  ;;  %v1769_v56 = vadd.f32 %v4649_v63, %v1768_v52 }
 0x213   : > { %v2306_v57 = vmax.f32 %v1926_v47, 0.0  ;;  %v2370_v58 = vmax.f32 %v2086_v48, 0.0 }
 0x214   : > { %v2179_v59 = vmax.f32 %v1609_v55, 0.0  ;;  %v2243_v7 = vmax.f32 %v1769_v56, 0.0  ;;  %3608 = vmatmul.msk.bf16.gmra.mxu0 %vm1095_vm1, %v3741_v45  ;;  %3640 = vmatmul.msk.bf16.gmra.mxu1 %vm1095_vm1, %v3773_v46 }
 0x215   : > { %v2760_v60 = vsel %vm2389_vm2, %v2306_v57, 0.0  ;;  %v2898_v61 = vsel %vm2389_vm2, %v2370_v58, 0.0  ;;  %3672 = vmatmul.msk.bf16.gmra.mxu2 %vm1095_vm1, %v3805_v53  ;;  %3704 = vmatmul.msk.bf16.gmra.mxu3 %vm1095_vm1, %v3837_v54 }
 0x216   : > { %v2761_v62 = vadd.f32 %v2760_v60, %v2759_v36  ;;  %v2899_v0 = vadd.f32 %v2898_v61, %v2897_v37  ;;  %v2486_v1 = vsel %vm2389_vm2, %v2179_v59, 0.0  ;;  %v2624_v2 = vsel %vm2389_vm2, %v2243_v7, 0.0 }
 0x217   : > { %v2487_v3 = vadd.f32 %v2486_v1, %v2485_v40  ;;  %v2625_v44 = vadd.f32 %v2624_v2, %v2623_v41 }
 0x218   : > { %v1928_v4 = vpop.f32.mrf.mxu2  ;;  %v2088_v5 = vpop.f32.mrf.mxu3 }
 0x219   : > { %v1929_v6 = vadd.f32 %v4649_v63, %v1928_v4  ;;  %v2089_v8 = vadd.f32 %v4649_v63, %v2088_v5  ;;  %v1610_v9 = vpop.f32.mrf.mxu0  ;;  %v1770_v10 = vpop.f32.mrf.mxu1 }
 0x21a   : > { %v1611_v11 = vadd.f32 %v4649_v63, %v1610_v9  ;;  %v1771_v12 = vadd.f32 %v4649_v63, %v1770_v10 }
 0x21b   : > { %v2307_v13 = vmax.f32 %v1929_v6, 0.0  ;;  %v2371_v14 = vmax.f32 %v2089_v8, 0.0 }
 0x21c   : > { %v2180_v15 = vmax.f32 %v1611_v11, 0.0  ;;  %v2244_v16 = vmax.f32 %v1771_v12, 0.0 }
 0x21d   : > { %v2762_v17 = vsel %vm2389_vm2, %v2307_v13, 0.0  ;;  %v2900_v18 = vsel %vm2389_vm2, %v2371_v14, 0.0 }
 0x21e   : > { %v2763_v19 = vadd.f32 %v2762_v17, %v2761_v62  ;;  %v2901_v20 = vadd.f32 %v2900_v18, %v2899_v0  ;;  %v2488_v21 = vsel %vm2389_vm2, %v2180_v15, 0.0  ;;  %v2626_v22 = vsel %vm2389_vm2, %v2244_v16, 0.0 }
 0x21f   : > { %v2489_v23 = vadd.f32 %v2488_v21, %v2487_v3  ;;  %v2627_v24 = vadd.f32 %v2626_v22, %v2625_v44 }
 0x220   : > { %v1930_v25 = vpop.f32.mrf.mxu2  ;;  %v2090_v26 = vpop.f32.mrf.mxu3 }
 0x221   : > { %v1931_v27 = vadd.f32 %v4649_v63, %v1930_v25  ;;  %v2091_v28 = vadd.f32 %v4649_v63, %v2090_v26  ;;  %v1613_v29 = vpop.f32.mrf.mxu0  ;;  %v1773_v30 = vpop.f32.mrf.mxu1 }
 0x222   : > { %v1614_v31 = vadd.f32 %v4649_v63, %v1613_v29  ;;  %v1774_v32 = vadd.f32 %v4649_v63, %v1773_v30 }
 0x223   : > { %v2308_v35 = vmax.f32 %v1931_v27, 0.0  ;;  %v2372_v36 = vmax.f32 %v2091_v28, 0.0 }
 0x224   : > { %v2181_v37 = vmax.f32 %v1614_v31, 0.0  ;;  %v2245_v38 = vmax.f32 %v1774_v32, 0.0 }
 0x225   : > { %v2764_v39 = vsel %vm2389_vm2, %v2308_v35, 0.0  ;;  %v2902_v40 = vsel %vm2389_vm2, %v2372_v36, 0.0 }
 0x226   : > { %v2765_v41 = vadd.f32 %v2764_v39, %v2763_v19  ;;  %v2903_v42 = vadd.f32 %v2902_v40, %v2901_v20  ;;  %v2490_v43 = vsel %vm2389_vm2, %v2181_v37, 0.0  ;;  %v2628_v45 = vsel %vm2389_vm2, %v2245_v38, 0.0 }
 0x227   : > { %v2491_v46 = vadd.f32 %v2490_v43, %v2489_v23  ;;  %v2629_v47 = vadd.f32 %v2628_v45, %v2627_v24 }
 0x228   : > { %v1933_v48 = vpop.f32.mrf.mxu2  ;;  %v2093_v49 = vpop.f32.mrf.mxu3 }
 0x229   : > { %v1934_v52 = vadd.f32 %v4649_v63, %v1933_v48  ;;  %v2094_v53 = vadd.f32 %v4649_v63, %v2093_v49  ;;  %v1615_v54 = vpop.f32.mrf.mxu0  ;;  %v1775_v55 = vpop.f32.mrf.mxu1 }
 0x22a   : > { %v1616_v56 = vadd.f32 %v4649_v63, %v1615_v54  ;;  %v1776_v57 = vadd.f32 %v4649_v63, %v1775_v55 }
 0x22b   : > { %v2309_v58 = vmax.f32 %v1934_v52, 0.0  ;;  %v2373_v59 = vmax.f32 %v2094_v53, 0.0 }
 0x22c   : > { %v2182_v7 = vmax.f32 %v1616_v56, 0.0  ;;  %v2246_v60 = vmax.f32 %v1776_v57, 0.0 }
 0x22d   : > { %v2766_v61 = vsel %vm2389_vm2, %v2309_v58, 0.0  ;;  %v2904_v62 = vsel %vm2389_vm2, %v2373_v59, 0.0 }
 0x22e   : > { %v2767_v0 = vadd.f32 %v2766_v61, %v2765_v41  ;;  %v2905_v1 = vadd.f32 %v2904_v62, %v2903_v42  ;;  %v2492_v2 = vsel %vm2389_vm2, %v2182_v7, 0.0  ;;  %v2630_v3 = vsel %vm2389_vm2, %v2246_v60, 0.0 }
 0x22f   : > { %v2493_v44 = vadd.f32 %v2492_v2, %v2491_v46  ;;  %v2631_v4 = vadd.f32 %v2630_v3, %v2629_v47 }
 0x230   : > { %v1935_v5 = vpop.f32.mrf.mxu2  ;;  %v2095_v6 = vpop.f32.mrf.mxu3 }
 0x231   : > { %v1936_v8 = vadd.f32 %v4649_v63, %v1935_v5  ;;  %v2096_v9 = vadd.f32 %v4649_v63, %v2095_v6  ;;  %v1618_v10 = vpop.f32.mrf.mxu0  ;;  %v1778_v11 = vpop.f32.mrf.mxu1 }
 0x232   : > { %v1619_v12 = vadd.f32 %v4649_v63, %v1618_v10  ;;  %v1779_v13 = vadd.f32 %v4649_v63, %v1778_v11 }
 0x233   : > { %v2310_v14 = vmax.f32 %v1936_v8, 0.0  ;;  %v2374_v15 = vmax.f32 %v2096_v9, 0.0 }
 0x234   : > { %v2183_v16 = vmax.f32 %v1619_v12, 0.0  ;;  %v2247_v17 = vmax.f32 %v1779_v13, 0.0 }
 0x235   : > { %v2768_v18 = vsel %vm2389_vm2, %v2310_v14, 0.0  ;;  %v2906_v19 = vsel %vm2389_vm2, %v2374_v15, 0.0 }
 0x236   : > { %v2769_v20 = vadd.f32 %v2768_v18, %v2767_v0  ;;  %v2907_v21 = vadd.f32 %v2906_v19, %v2905_v1  ;;  %v2494_v22 = vsel %vm2389_vm2, %v2183_v16, 0.0  ;;  %v2632_v23 = vsel %vm2389_vm2, %v2247_v17, 0.0 }
 0x237   : > { %v2495_v24 = vadd.f32 %v2494_v22, %v2493_v44  ;;  %v2633_v25 = vadd.f32 %v2632_v23, %v2631_v4 }
 0x238   : > { %v1938_v26 = vpop.f32.mrf.mxu2  ;;  %v2098_v27 = vpop.f32.mrf.mxu3 }
 0x239   : > { %v1939_v28 = vadd.f32 %v4649_v63, %v1938_v26  ;;  %v2099_v29 = vadd.f32 %v4649_v63, %v2098_v27  ;;  %v1620_v30 = vpop.f32.mrf.mxu0  ;;  %v1780_v31 = vpop.f32.mrf.mxu1 }
 0x23a   : > { %v1621_v32 = vadd.f32 %v4649_v63, %v1620_v30  ;;  %v1781_v35 = vadd.f32 %v4649_v63, %v1780_v31 }
 0x23b   : > { %v2311_v36 = vmax.f32 %v1939_v28, 0.0  ;;  %v2375_v37 = vmax.f32 %v2099_v29, 0.0 }
 0x23c   : > { %v2184_v38 = vmax.f32 %v1621_v32, 0.0  ;;  %v2248_v39 = vmax.f32 %v1781_v35, 0.0 }
 0x23d   : > { %v2770_v40 = vsel %vm2389_vm2, %v2311_v36, 0.0  ;;  %v2908_v41 = vsel %vm2389_vm2, %v2375_v37, 0.0  ;;  %v2453_v37 = vrot.slane %v4492_v33, 4 }
 0x23e   : > { %v2771_v42 = vadd.f32 %v2770_v40, %v2769_v20  ;;  %v2909_v43 = vadd.f32 %v2908_v41, %v2907_v21  ;;  %v2496_v45 = vsel %vm2389_vm2, %v2184_v38, 0.0  ;;  %v2634_v46 = vsel %vm2389_vm2, %v2248_v39, 0.0 }
 0x23f   : > { %v2497_v47 = vadd.f32 %v2496_v45, %v2495_v24  ;;  %v2635_v48 = vadd.f32 %v2634_v46, %v2633_v25 }
 0x240   : > { %v1940_v49 = vpop.f32.mrf.mxu2  ;;  %v2100_v52 = vpop.f32.mrf.mxu3 }
 0x241   : > { %v1941_v53 = vadd.f32 %v4649_v63, %v1940_v49  ;;  %v2101_v54 = vadd.f32 %v4649_v63, %v2100_v52  ;;  %v1623_v55 = vpop.f32.mrf.mxu0  ;;  %v1783_v56 = vpop.f32.mrf.mxu1 }
 0x242   : > { %v1624_v57 = vadd.f32 %v4649_v63, %v1623_v55  ;;  %v1784_v58 = vadd.f32 %v4649_v63, %v1783_v56 }
 0x243   : > { %v2312_v59 = vmax.f32 %v1941_v53, 0.0  ;;  %v2376_v7 = vmax.f32 %v2101_v54, 0.0 }
 0x244   : > { %v2185_v60 = vmax.f32 %v1624_v57, 0.0  ;;  %v2249_v61 = vmax.f32 %v1784_v58, 0.0  ;;  %v2867_v58 = vrot.slane %v4510_v51, 4 }
 0x245   : > { %v2772_v62 = vsel %vm2389_vm2, %v2312_v59, 0.0  ;;  %v2910_v0 = vsel %vm2389_vm2, %v2376_v7, 0.0 }
 0x246   : > { %v2773_v1 = vadd.f32 %v2772_v62, %v2771_v42  ;;  %v2911_v2 = vadd.f32 %v2910_v0, %v2909_v43  ;;  %v2498_v3 = vsel %vm2389_vm2, %v2185_v60, 0.0  ;;  %v2636_v44 = vsel %vm2389_vm2, %v2249_v61, 0.0 }
 0x247   : > { %v4737_v4 = vadd.f32 %v2498_v3, %v2497_v47  ;;  %v4739_v5 = vadd.f32 %v2636_v44, %v2635_v48  ;;  %v2454_v42 = vadd.f32 %v2453_v37, %v4492_v33  ;;  %v2591_v43 = vrot.slane %v4494_v34, 4 }
 0x248   : > { %v1943_v6 = vpop.f32.mrf.mxu2  ;;  %v2103_v8 = vpop.f32.mrf.mxu3  ;;  %v2729_v47 = vrot.slane %v4508_v50, 4 }
 0x249   : > { %v1944_v9 = vadd.f32 %v4649_v63, %v1943_v6  ;;  %v2104_v10 = vadd.f32 %v4649_v63, %v2103_v8  ;;  %v1625_v11 = vpop.f32.mrf.mxu0  ;;  %v1785_v12 = vpop.f32.mrf.mxu1  ;;  %v2455_v52 = vrot.slane %v2454_v42, 2  ;;  %v4774_v53 = vadd.f32 %v2591_v43, %v4494_v34 }
 0x24a   : > { %v1626_v45 = vadd.f32 %v4649_v63, %v1625_v11  ;;  %v1786_v46 = vadd.f32 %v4649_v63, %v1785_v12  ;;  %v4779_v57 = vadd.f32 %v2729_v47, %v4508_v50  ;;  %v4801_v12 = vadd.f32 %v2867_v58, %v4510_v51 }
 0x24b   : > { %v2313_v13 = vmax.f32 %v1944_v9, 0.0  ;;  %v2377_v14 = vmax.f32 %v2104_v10, 0.0  ;;  %v2593_v50 = vrot.slane %v4774_v53, 2 }
 0x24c   : > { %v2186_v54 = vmax.f32 %v1626_v45, 0.0  ;;  %v2250_v55 = vmax.f32 %v1786_v46, 0.0  ;;  %v2731_v11 = vrot.slane %v4779_v57, 2 }
 0x24d   : > { %v2774_v15 = vsel %vm2389_vm2, %v2313_v13, 0.0  ;;  %v2912_v16 = vsel %vm2389_vm2, %v2377_v14, 0.0 }
 0x24e   : > { %v4745_v17 = vadd.f32 %v2774_v15, %v2773_v1  ;;  %v4747_v18 = vadd.f32 %v2912_v16, %v2911_v2  ;;  %v4792_v2 = vadd.f32 %v2455_v52, %v2454_v42  ;;  %v2500_v6 = vsel %vm2389_vm2, %v2186_v54, 0.0 }
 0x24f   : > { %v2638_v8 = vsel %vm2389_vm2, %v2250_v55, 0.0 }
 0x250   : > { %v1945_v19 = vpop.f32.mrf.mxu2  ;;  %v2105_v20 = vpop.f32.mrf.mxu3 }
 0x251   : > { %v1628_v21 = vpop.f32.mrf.mxu0  ;;  %v1788_v22 = vpop.f32.mrf.mxu1  ;;  %v1946_v48 = vadd.f32 %v4649_v63, %v1945_v19  ;;  %v2106_v49 = vadd.f32 %v4649_v63, %v2105_v20 }
 0x252   : > { %v1629_v33 = vadd.f32 %v4649_v63, %v1628_v21  ;;  %v1789_v56 = vadd.f32 %v4649_v63, %v1788_v22  ;;  %v2501_v21 = vadd.f32 %v2500_v6, %v4737_v4  ;;  %v2639_v22 = vadd.f32 %v2638_v8, %v4739_v5 }
 0x253   : > { %v2314_v34 = vmax.f32 %v1946_v48, 0.0  ;;  %v2378_v62 = vmax.f32 %v2106_v49, 0.0 }
 0x254   : > { %v2187_v9 = vmax.f32 %v1629_v33, 0.0  ;;  %v2251_v10 = vmax.f32 %v1789_v56, 0.0 }
 0x255   : > { %v2776_v15 = vsel %vm2389_vm2, %v2314_v34, 0.0  ;;  %v2914_v16 = vsel %vm2389_vm2, %v2378_v62, 0.0 }
 0x256   : > { %v2640_v51 = vsel %vm2389_vm2, %v2251_v10, 0.0  ;;  %v2777_v42 = vadd.f32 %v2776_v15, %v4745_v17 }
 0x258   : > { %v1948_v23 = vpop.f32.mrf.mxu2  ;;  %v2108_v24 = vpop.f32.mrf.mxu3 }
 0x259   : > { %v1630_v25 = vpop.f32.mrf.mxu0  ;;  %v1790_v26 = vpop.f32.mrf.mxu1  ;;  %v1949_v59 = vadd.f32 %v4649_v63, %v1948_v23  ;;  %v2109_v7 = vadd.f32 %v4649_v63, %v2108_v24 }
 0x25a   : > { %v1631_v3 = vadd.f32 %v4649_v63, %v1630_v25  ;;  %v1791_v44 = vadd.f32 %v4649_v63, %v1790_v26  ;;  %v2502_v25 = vsel %vm2389_vm2, %v2187_v9, 0.0 }
 0x25b   : > { %v2315_v13 = vmax.f32 %v1949_v59, 0.0  ;;  %v2379_v14 = vmax.f32 %v2109_v7, 0.0  ;;  %v2503_v48 = vadd.f32 %v2502_v25, %v2501_v21 }
 0x25c   : > { %v2188_v23 = vmax.f32 %v1631_v3, 0.0  ;;  %v2252_v24 = vmax.f32 %v1791_v44, 0.0 }
 0x25d   : > { %v2916_v4 = vsel %vm2389_vm2, %v2379_v14, 0.0 }
 0x25e   : > { %v2504_v49 = vsel %vm2389_vm2, %v2188_v23, 0.0  ;;  %v2642_v52 = vsel %vm2389_vm2, %v2252_v24, 0.0 }
 0x25f   : > { %v2505_v44 = vadd.f32 %v2504_v49, %v2503_v48 }
 0x260   : > { %v1950_v27 = vpop.f32.mrf.mxu2  ;;  %v2110_v28 = vpop.f32.mrf.mxu3 }
 0x261   : > { %v1633_v29 = vpop.f32.mrf.mxu0  ;;  %v1793_v30 = vpop.f32.mrf.mxu1  ;;  %v1951_v19 = vadd.f32 %v4649_v63, %v1950_v27  ;;  %v2111_v20 = vadd.f32 %v4649_v63, %v2110_v28  ;;  %v2915_v27 = vadd.f32 %v2914_v16, %v4747_v18  ;;  %v2778_v28 = vsel %vm2389_vm2, %v2315_v13, 0.0 }
 0x262   : > { %v1634_v26 = vadd.f32 %v4649_v63, %v1633_v29  ;;  %v1794_v37 = vadd.f32 %v4649_v63, %v1793_v30  ;;  %v2641_v18 = vadd.f32 %v2640_v51, %v2639_v22 }
 0x263   : > { %v2316_v45 = vmax.f32 %v1951_v19, 0.0  ;;  %v2380_v46 = vmax.f32 %v2111_v20, 0.0  ;;  %v2917_v58 = vadd.f32 %v2916_v4, %v2915_v27 }
 0x264   : > { %v2189_v54 = vmax.f32 %v1634_v26, 0.0  ;;  %v2253_v55 = vmax.f32 %v1794_v37, 0.0  ;;  %v2643_v6 = vadd.f32 %v2642_v52, %v2641_v18 }
 0x265   : > { %v2780_v7 = vsel %vm2389_vm2, %v2316_v45, 0.0  ;;  %v2918_v34 = vsel %vm2389_vm2, %v2380_v46, 0.0 }
 0x266   : > { %v2506_v8 = vsel %vm2389_vm2, %v2189_v54, 0.0  ;;  %v2919_v13 = vadd.f32 %v2918_v34, %v2917_v58 }
 0x267   : > { %v2507_v24 = vadd.f32 %v2506_v8, %v2505_v44 }
 0x268   : > { %v4749_v31 = vpop.f32.mrf.mxu2  ;;  %v4751_v32 = vpop.f32.mrf.mxu3 }
 0x269   : > { %v4753_v35 = vpop.f32.mrf.mxu0  ;;  %v4755_v36 = vpop.f32.mrf.mxu1  ;;  %v1954_v47 = vadd.f32 %v4649_v63, %v4749_v31  ;;  %v2114_v29 = vadd.f32 %v4649_v63, %v4751_v32  ;;  %v2779_v31 = vadd.f32 %v2778_v28, %v2777_v42 }
 0x26a   : > { %v1636_v33 = vadd.f32 %v4649_v63, %v4753_v35  ;;  %v1796_v56 = vadd.f32 %v4649_v63, %v4755_v36 }
 0x26b   : > { %v2317_v62 = vmax.f32 %v1954_v47, 0.0  ;;  %v2381_v3 = vmax.f32 %v2114_v29, 0.0  ;;  %v2781_v10 = vadd.f32 %v2780_v7, %v2779_v31 }
 0x26c   : > { %v2190_v9 = vmax.f32 %v1636_v33, 0.0 }
 0x26d   : > { %v2782_v20 = vsel %vm2389_vm2, %v2317_v62, 0.0  ;;  %v2920_v21 = vsel %vm2389_vm2, %v2381_v3, 0.0 }
 0x26e   : > { %v2508_v37 = vsel %vm2389_vm2, %v2190_v9, 0.0  ;;  %v2921_v4 = vadd.f32 %v2920_v21, %v2919_v13 }
 0x26f   : > { %v2509_v18 = vadd.f32 %v2508_v37, %v2507_v24 }
 0x270   : > { %v4758_v38 = vpop.f32.mrf.mxu2  ;;  %v4760_v39 = vpop.f32.mrf.mxu3 }
 0x271   : > { %v4762_v40 = vpop.f32.mrf.mxu0  ;;  %v4764_v41 = vpop.f32.mrf.mxu1  ;;  %v1956_v32 = vadd.f32 %v4649_v63, %v4758_v38  ;;  %v2116_v59 = vadd.f32 %v4649_v63, %v4760_v39  ;;  %v2644_v38 = vsel %vm2389_vm2, %v2253_v55, 0.0  ;;  %v2254_v39 = vmax.f32 %v1796_v56, 0.0 }
 0x272   : > { %v1639_v35 = vadd.f32 %v4649_v63, %v4762_v40  ;;  %v1799_v36 = vadd.f32 %v4649_v63, %v4764_v41  ;;  %v2645_v25 = vadd.f32 %v2644_v38, %v2643_v6 }
 0x273   : > { %v2318_v14 = vmax.f32 %v1956_v32, 0.0  ;;  %v2382_v15 = vmax.f32 %v2116_v59, 0.0  ;;  %v2646_v42 = vsel %vm2389_vm2, %v2254_v39, 0.0 }
 0x274   : > { %v2191_v51 = vmax.f32 %v1639_v35, 0.0  ;;  %v2255_v26 = vmax.f32 %v1799_v36, 0.0  ;;  %v2647_v49 = vadd.f32 %v2646_v42, %v2645_v25 }
 0x275   : > { %v2922_v45 = vsel %vm2389_vm2, %v2382_v15, 0.0 }
 0x276   : > { %v2510_v52 = vsel %vm2389_vm2, %v2191_v51, 0.0  ;;  %v2923_v31 = vadd.f32 %v2922_v45, %v2921_v4 }
 0x278   : > { %v4784_v60 = vpop.f32.mrf.mxu2  ;;  %v4786_v61 = vpop.f32.mrf.mxu3 }
 0x279   : > { %v4788_v0 = vpop.f32.mrf.mxu0  ;;  %v4790_v1 = vpop.f32.mrf.mxu1  ;;  %v1959_v40 = vadd.f32 %v4649_v63, %v4784_v60  ;;  %v2119_v41 = vadd.f32 %v4649_v63, %v4786_v61  ;;  %v2783_v60 = vadd.f32 %v2782_v20, %v2781_v10  ;;  %v2784_v61 = vsel %vm2389_vm2, %v2318_v14, 0.0 }
 0x27a   : > { %v1641_v27 = vadd.f32 %v4649_v63, %v4788_v0  ;;  %v1801_v28 = vadd.f32 %v4649_v63, %v4790_v1  ;;  %v2648_v0 = vsel %vm2389_vm2, %v2255_v26, 0.0 }
 0x27b   : > { %v2319_v46 = vmax.f32 %v1959_v40, 0.0  ;;  %v2383_v47 = vmax.f32 %v2119_v41, 0.0  ;;  %v2785_v56 = vadd.f32 %v2784_v61, %v2783_v60  ;;  %v2649_v6 = vadd.f32 %v2648_v0, %v2647_v49 }
 0x27c   : > { %v2192_v54 = vmax.f32 %v1641_v27, 0.0  ;;  %v2256_v1 = vmax.f32 %v1801_v28, 0.0 }
 0x27d   : > { %v2786_v59 = vsel %vm2389_vm2, %v2319_v46, 0.0  ;;  %v2924_v7 = vsel %vm2389_vm2, %v2383_v47, 0.0 }
 0x27e   : > { %v2512_v36 = vsel %vm2389_vm2, %v2192_v54, 0.0  ;;  %v2650_v8 = vsel %vm2389_vm2, %v2256_v1, 0.0  ;;  %v2787_v39 = vadd.f32 %v2786_v59, %v2785_v56  ;;  %v2925_v10 = vadd.f32 %v2924_v7, %v2923_v31 }
 0x280   : > { %v4817_v43 = vpop.f32.mrf.mxu2  ;;  %v4819_v5 = vpop.f32.mrf.mxu3 }
 0x281   : > { %v1643_v30 = vpop.f32.mrf.mxu0  ;;  %v1803_v17 = vpop.f32.mrf.mxu1  ;;  %v1961_v55 = vadd.f32 %v4649_v63, %v4817_v43  ;;  %v2121_v33 = vadd.f32 %v4649_v63, %v4819_v5  ;;  %v2511_v43 = vadd.f32 %v2510_v52, %v2509_v18 }
 0x282   : > { %v1644_v29 = vadd.f32 %v4649_v63, %v1643_v30  ;;  %v1804_v48 = vadd.f32 %v4649_v63, %v1803_v17 }
 0x283   : > { %v2320_v38 = vmax.f32 %v1961_v55, 0.0  ;;  %v2384_v9 = vmax.f32 %v2121_v33, 0.0  ;;  %v2513_v41 = vadd.f32 %v2512_v36, %v2511_v43 }
 0x284   : > { %v2193_v34 = vmax.f32 %v1644_v29, 0.0  ;;  %v2257_v62 = vmax.f32 %v1804_v48, 0.0 }
 0x285   : > { %v2788_v25 = vsel %vm2389_vm2, %v2320_v38, 0.0  ;;  %v2926_v51 = vsel %vm2389_vm2, %v2384_v9, 0.0 }
 0x286   : > { %v2514_v15 = vsel %vm2389_vm2, %v2193_v34, 0.0  ;;  %v2652_v20 = vsel %vm2389_vm2, %v2257_v62, 0.0  ;;  %v2789_v7 = vadd.f32 %v2788_v25, %v2787_v39  ;;  %v2927_v34 = vadd.f32 %v2926_v51, %v2925_v10 }
 0x287   : > { %v2515_v42 = vadd.f32 %v2514_v15, %v2513_v41  ;;  %v2732_v51 = vadd.f32 %v2731_v11, %v4779_v57 }
 0x288   : > { %v1963_v16 = vpop.f32.mrf.mxu2  ;;  %v2123_v19 = vpop.f32.mrf.mxu3 }
 0x289   : > { %v1645_v22 = vpop.f32.mrf.mxu0  ;;  %v1805_v23 = vpop.f32.mrf.mxu1  ;;  %v1964_v21 = vadd.f32 %v4649_v63, %v1963_v16  ;;  %v2124_v40 = vadd.f32 %v4649_v63, %v2123_v19 }
 0x28a   : > { %v1646_v30 = vadd.f32 %v4649_v63, %v1645_v22  ;;  %v1806_v17 = vadd.f32 %v4649_v63, %v1805_v23  ;;  %v2651_v22 = vadd.f32 %v2650_v8, %v2649_v6 }
 0x28b   : > { %v2321_v4 = vmax.f32 %v1964_v21, 0.0  ;;  %v2385_v61 = vmax.f32 %v2124_v40, 0.0  ;;  %v2594_v21 = vadd.f32 %v2593_v50, %v4774_v53 }
 0x28c   : > { %v2194_v13 = vmax.f32 %v1646_v30, 0.0  ;;  %v2258_v14 = vmax.f32 %v1806_v17, 0.0  ;;  %v2653_v27 = vadd.f32 %v2652_v20, %v2651_v22  ;;  %v2457_v20 = vrot.slane %v4792_v2, 1 }
 0x28d   : > { %v2790_v17 = vsel %vm2389_vm2, %v2321_v4, 0.0  ;;  %v2595_v50 = vrot.slane %v2594_v21, 1 }
 0x28e   : > { %v2516_v28 = vsel %vm2389_vm2, %v2194_v13, 0.0  ;;  %v2654_v16 = vsel %vm2389_vm2, %v2258_v14, 0.0  ;;  %v2458_v57 = vadd.f32 %v2457_v20, %v4792_v2 }
 0x28f   : > { %v2517_v0 = vadd.f32 %v2516_v28, %v2515_v42  ;;  %v2655_v54 = vadd.f32 %v2654_v16, %v2653_v27 }
 0x290   : > { %v1965_v58 = vpop.f32.mrf.mxu2  ;;  %v2125_v32 = vpop.f32.mrf.mxu3 }
 0x291   : > { %v1648_v3 = vpop.f32.mrf.mxu0  ;;  %v1808_v44 = vpop.f32.mrf.mxu1  ;;  %v1966_v26 = vadd.f32 %v4649_v63, %v1965_v58  ;;  %v2126_v37 = vadd.f32 %v4649_v63, %v2125_v32  ;;  %v2928_v58 = vsel %vm2389_vm2, %v2385_v61, 0.0  ;;  %v2733_v61 = vrot.slane %v2732_v51, 1 }
 0x292   : > { %v1649_v5 = vadd.f32 %v4649_v63, %v1648_v3  ;;  %v1809_v35 = vadd.f32 %v4649_v63, %v1808_v44  ;;  %v2929_v36 = vadd.f32 %v2928_v58, %v2927_v34 }
 0x293   : > { %v2322_v1 = vmax.f32 %v1966_v26, 0.0  ;;  %v2386_v55 = vmax.f32 %v2126_v37, 0.0  ;;  %v2869_v26 = vrot.slane %v4801_v12, 2 }
 0x294   : > { %v2195_v23 = vmax.f32 %v1649_v5, 0.0  ;;  %v2259_v24 = vmax.f32 %v1809_v35, 0.0  ;;  %v2791_v35 = vadd.f32 %v2790_v17, %v2789_v7 }
 0x295   : > { %v2792_v44 = vsel %vm2389_vm2, %v2322_v1, 0.0  ;;  %v2930_v43 = vsel %vm2389_vm2, %v2386_v55, 0.0  ;;  %v2870_v11 = vadd.f32 %v2869_v26, %v4801_v12 }
 0x296   : > { %v2518_v48 = vsel %vm2389_vm2, %v2195_v23, 0.0  ;;  %v2656_v18 = vsel %vm2389_vm2, %v2259_v24, 0.0  ;;  %v2793_v40 = vadd.f32 %v2792_v44, %v2791_v35  ;;  %v2931_v41 = vadd.f32 %v2930_v43, %v2929_v36 }
 0x297   : > { %v2519_v32 = vadd.f32 %v2518_v48, %v2517_v0  ;;  %v2657_v59 = vadd.f32 %v2656_v18, %v2655_v54  ;;  %v2596_v48 = vadd.f32 %v2595_v50, %v2594_v21  ;;  %v2734_v54 = vadd.f32 %v2733_v61, %v2732_v51 }
 0x298   : > { %v1968_v60 = vpop.f32.mrf.mxu2  ;;  %v2128_v19 = vpop.f32.mrf.mxu3 }
 0x299   : > { %v1969_v45 = vadd.f32 %v4649_v63, %v1968_v60  ;;  %v2129_v46 = vadd.f32 %v4649_v63, %v2128_v19  ;;  %v1650_v47 = vpop.f32.mrf.mxu0  ;;  %v1810_v29 = vpop.f32.mrf.mxu1  ;;  %v2944_v2 = vmul.f32 0.00390625, %v2596_v48 }
 0x29a   : > { %v1651_v49 = vadd.f32 %v4649_v63, %v1650_v47  ;;  %v1811_v52 = vadd.f32 %v4649_v63, %v1810_v29 }
 0x29b   : > { %v2323_v33 = vmax.f32 %v1969_v45, 0.0  ;;  %v2387_v56 = vmax.f32 %v2129_v46, 0.0 }
 0x29c   : > { %v2196_v31 = vmax.f32 %v1651_v49, 0.0  ;;  %v2260_v30 = vmax.f32 %v1811_v52, 0.0 }
 0x29d   : > { %v2794_v8 = vsel %vm2389_vm2, %v2323_v33, 0.0  ;;  %v2932_v38 = vsel %vm2389_vm2, %v2387_v56, 0.0  ;;  %v2942_v33 = vmul.f32 0.00390625, %v2458_v57  ;;  %v2871_v56 = vrot.slane %v2870_v11, 1 }
 0x29e   : > { %v2520_v62 = vsel %vm2389_vm2, %v2196_v31, 0.0  ;;  %v2658_v3 = vsel %vm2389_vm2, %v2260_v30, 0.0  ;;  %v2795_v37 = vadd.f32 %v2794_v8, %v2793_v40 }
 0x29f   : > { %v2521_v6 = vadd.f32 %v2520_v62, %v2519_v32  ;;  %v2659_v5 = vadd.f32 %v2658_v3, %v2657_v59  ;;  %v2946_v32 = vmul.f32 0.00390625, %v2734_v54  ;;  %v2872_v62 = vadd.f32 %v2871_v56, %v2870_v11 }
 0x2a0   : > { %v1970_v9 = vpop.f32.mrf.mxu2  ;;  %v2130_v13 = vpop.f32.mrf.mxu3 }
 0x2a1   : > { %v2522_v39 = vrot.slane %v2521_v6, 4  ;;  %v2660_v10 = vrot.slane %v2659_v5, 4  ;;  %v1971_v14 = vadd.f32 %v4649_v63, %v1970_v9  ;;  %v2131_v15 = vadd.f32 %v4649_v63, %v2130_v13 }
 0x2a2   : > { %v2933_v63 = vadd.f32 %v2932_v38, %v2931_v41  ;;  %v2948_v35 = vmul.f32 0.00390625, %v2872_v62 }
 0x2a3   : > { %v2523_v22 = vadd.f32 %v2522_v39, %v2521_v6  ;;  %v2661_v23 = vadd.f32 %v2660_v10, %v2659_v5  ;;  %v2324_v24 = vmax.f32 %v1971_v14, 0.0  ;;  %v2388_v25 = vmax.f32 %v2131_v15, 0.0 }
 0x2a5   : > { %v2524_v42 = vrot.slane %v2523_v22, 2  ;;  %v2662_v27 = vrot.slane %v2661_v23, 2  ;;  %v2796_v28 = vsel %vm2389_vm2, %v2324_v24, 0.0  ;;  %v2934_v53 = vsel %vm2389_vm2, %v2388_v25, 0.0 }
 0x2a6   : > { %v2797_v16 = vadd.f32 %v2796_v28, %v2795_v37  ;;  %v2935_v60 = vadd.f32 %v2934_v53, %v2933_v63 }
 0x2a7   : > { %v2525_v19 = vadd.f32 %v2524_v42, %v2523_v22  ;;  %v2663_v4 = vadd.f32 %v2662_v27, %v2661_v23 }
 0x2a8   : > { %v2798_v45 = vrot.slane %v2797_v16, 4  ;;  %v2936_v46 = vrot.slane %v2935_v60, 4 }
 0x2a9   : > { %v2526_v47 = vrot.slane %v2525_v19, 1  ;;  %v2664_v29 = vrot.slane %v2663_v4, 1 }
 0x2aa   : > { %v2799_v18 = vadd.f32 %v2798_v45, %v2797_v16  ;;  %v2937_v49 = vadd.f32 %v2936_v46, %v2935_v60 }
 0x2ab   : > { %v2527_v52 = vadd.f32 %v2526_v47, %v2525_v19  ;;  %v2665_v0 = vadd.f32 %v2664_v29, %v2663_v4 }
 0x2ac   : > { %v2800_v1 = vrot.slane %v2799_v18, 2  ;;  %v2938_v55 = vrot.slane %v2937_v49, 2 }
 0x2ad   : > { %v2943_v31 = vmul.f32 0.00390625, %v2527_v52  ;;  %v2945_v58 = vmul.f32 0.00390625, %v2665_v0 }
 0x2ae   : > { %v2801_v12 = vadd.f32 %v2800_v1, %v2799_v18  ;;  %v2939_v30 = vadd.f32 %v2938_v55, %v2937_v49 }
 0x2af   : > { %v2959_v17 = vsel %vm2958_vm3, %v2943_v31, %v2942_v33 }
 0x2b0   : > { %v2802_v59 = vrot.slane %v2801_v12, 1  ;;  %v2940_v7 = vrot.slane %v2939_v30, 1  ;;  %v2961_v34 = vsel %vm2960_vm4, %v2944_v2, %v2959_v17 }
 0x2b1   : > { %v2963_v3 = vsel %vm2962_vm5, %v2945_v58, %v2961_v34 }
 0x2b2   : > { %v2803_v44 = vadd.f32 %v2802_v59, %v2801_v12  ;;  %v2941_v43 = vadd.f32 %v2940_v7, %v2939_v30  ;;  %v2965_v6 = vsel %vm2964_vm6, %v2946_v32, %v2963_v3 }
 0x2b4   : > { %v2947_v5 = vmul.f32 0.00390625, %v2803_v44  ;;  %v2949_v36 = vmul.f32 0.00390625, %v2941_v43 }
 0x2b6   : > { %v2967_v8 = vsel %vm2966_vm7, %v2947_v5, %v2965_v6 }
 0x2b7   : > { %v2969_v38 = vsel %vm2968_vm8, %v2948_v35, %v2967_v8 }
 0x2b8   : > { %v2971_v9 = vsel %vm2970_vm9, %v2949_v36, %v2969_v38 }
 0x2b9   : > { %2973 = vst.msk [vmem:[%s166_s29] sm:$0xff] %vm2389_vm2, %v2971_v9 }
 0x2ba   : > { %3918 = shalt.err (!%p3915_p3)
}
 0x2bb   : > { %3849 = dma.vmem_to_hbm [thread:$0]  (%p4010_p5), %s2988_s30, 128, %s2990_s4, %s2975_s26  }
 0x2bc PF: > { %p3855_p4 = scmp.ge.s32.totalorder %s3953_s15, 2  ;;  %s3001_s16 = sand.u32 1, %s3941_s12  }
 0x2bd   : > { %s3002_s17 = scalar_lea.sflag [#allocation3], %s3001_s16 }
 0x2be   : > { %p3852_p7 = pnand %p3855_p4, %p4014_p6 }
 0x2c0   : > { %p3853_p8 = pneg %p3852_p7 }
 0x2c2   : > { %3936 = dma.done.wait (%p3853_p8), %s3002_s17, 128  }
 0x2c3   : > { %3938 = vsyncadd (%p3853_p8), %s3002_s17, 4294967168  ;;  %p13_p9 = scmp.ge.s32.totalorder %s3998_s18, 4   ;;  %s4957_s12 = smov %s3945_s13 }
 0x2c4   : > { %s4958_s13 = smov %s3949_s14  ;;  %s4959_s14 = smov %s4008_s21 }
 0x2c5   : > { %s4960_s15 = smov %s3998_s18  ;;  %15 = sbr.rel (!%p13_p9) target bundleno = 3 (0x3), region = 67 }
 0x2ca   :  { %3008 = vsyncpa [#allocation3], 1 }
 0x2cb   :  { %3010 = vsyncpa [#allocation3 + $0x1], 1 }

</bundles_post_ra>
